<compile_context>
chip_gen: v7x
topology: tpu7x:2x2x1
jax: 0.10.0
libtpu: 0.0.40
codegen_flags: <defaults>
</compile_context>

<pallas_src>
import jax
import jax.numpy as jnp
from jax.experimental import pallas as pl
from jax.experimental.pallas import tpu as pltpu

ALPHA = 0.2                      # LeakyReLU negative slope
EPS = 1e-5                       # BatchNorm eps
MATMUL_DTYPE = jnp.bfloat16      # MXU operand dtype; accumulation is f32
ACT_DTYPE = jnp.bfloat16         # inter-layer activation storage dtype
VMEM_LIMIT = 32 * 1024 * 1024    # safe scoped-VMEM limit on v5e/v6e/v7x


def _lrelu(y):
    return jnp.where(y >= 0, y, ALPHA * y)


# --------------------------------------------------------------------------
# Kernel 1: conv GEMM + LeakyReLU  (M-tiled, lane-dense (Cout, M) bf16 output)
# --------------------------------------------------------------------------
def _gemm_lrelu_kernel(w_ref, a_ref, o_ref):
    y = jnp.dot(w_ref[...], a_ref[...], preferred_element_type=jnp.float32)
    o_ref[...] = _lrelu(y).astype(o_ref.dtype)


def conv_gemm_lrelu(wT, aT, tm=512):
    c_out, k = wT.shape
    _, m = aT.shape
    if m <= tm:
        tm_eff, m_pad = m, m            # single full-M block (tiny inputs)
    else:
        tm_eff = tm
        m_pad = tm * pl.cdiv(m, tm)     # pad M -> multiple of tm (LReLU is
        if m_pad != m:                  # elementwise, padded cols sliced off)
            aT = jnp.pad(aT, ((0, 0), (0, m_pad - m)))
    y = pl.pallas_call(
        _gemm_lrelu_kernel,
        out_shape=jax.ShapeDtypeStruct((c_out, m_pad), ACT_DTYPE),
        grid=(m_pad // tm_eff,),
        in_specs=[
            pl.BlockSpec((c_out, k), lambda i: (0, 0)),
            pl.BlockSpec((k, tm_eff), lambda i: (0, i)),
        ],
        out_specs=pl.BlockSpec((c_out, tm_eff), lambda i: (0, i)),
        compiler_params=pltpu.CompilerParams(
            dimension_semantics=("parallel",),
            vmem_limit_bytes=VMEM_LIMIT,
        ),
    )(wT, aT)
    return y[:, :m] if m_pad != m else y


# --------------------------------------------------------------------------
# Kernel 2: conv GEMM + BatchNorm(batch stats, affine) + LeakyReLU
#   grid = (Cout tiles [parallel], M tiles [arbitrary])
#   Per M tile: GEMM -> stage f32 result in VMEM scratch (input DMA overlaps
#   MXU).  On the last M tile: two-pass per-channel stats over the
#   VMEM-resident scratch, normalize + affine + LeakyReLU, store bf16.
# --------------------------------------------------------------------------
def _gemm_bn_lrelu_kernel(w_ref, a_ref, g_ref, b_ref, o_ref, y_ref):
    j = pl.program_id(1)
    y = jnp.dot(w_ref[...], a_ref[...], preferred_element_type=jnp.float32)
    y_ref[j] = y                                        # (tc, tm) into slot j

    @pl.when(j == pl.num_programs(1) - 1)
    def _():
        yf = y_ref[...]                                 # (mt, tc, tm) f32
        mt, tc, tm = yf.shape
        m = mt * tm

        def rowsum(z):                                  # reduce lanes, then tiles
            return jnp.sum(jnp.sum(z, axis=2, keepdims=True), axis=0,
                           keepdims=True)               # (1, tc, 1)

        mean = rowsum(yf) * (1.0 / m)
        cen = yf - mean
        var = rowsum(cen * cen) * (1.0 / m)             # biased (PyTorch train)
        scale = jax.lax.rsqrt(var + EPS) * g_ref[...][None]   # (1, tc, 1)
        shift = b_ref[...][None]
        normed = _lrelu(cen * scale + shift)            # (mt, tc, tm) f32
        for jj in range(mt):                            # static lane-aligned stores
            o_ref[:, jj * tm:(jj + 1) * tm] = normed[jj].astype(o_ref.dtype)


def _pick_m_tile(m, prefer=(2048, 1024, 512, 256)):
    # BN stats need exact M (zero-padding would corrupt mean/var), so the tile
    # must divide M.  TODO(synk): masked remainder tile for awkward M.
    for cand in prefer:
        if m > cand and m % cand == 0:
            return cand
    return m


def conv_gemm_bn_lrelu(wT, aT, gamma, beta):
    c_out, k = wT.shape
    _, m = aT.shape
    # Per-channel stats are independent -> split Cout 2-way (>=16-row, bf16
    # friendly blocks) so v7x's two TensorCores both run.
    tc = c_out // 2 if (c_out % 32 == 0) else c_out
    tm = _pick_m_tile(m)
    mt = m // tm
    return pl.pallas_call(
        _gemm_bn_lrelu_kernel,
        out_shape=jax.ShapeDtypeStruct((c_out, m), ACT_DTYPE),
        grid=(c_out // tc, mt),
        in_specs=[
            pl.BlockSpec((tc, k), lambda i, j: (i, 0)),
            pl.BlockSpec((k, tm), lambda i, j: (0, j)),
            pl.BlockSpec((tc, 1), lambda i, j: (i, 0)),
            pl.BlockSpec((tc, 1), lambda i, j: (i, 0)),
        ],
        out_specs=pl.BlockSpec((tc, m), lambda i, j: (i, 0)),
        scratch_shapes=[pltpu.VMEM((mt, tc, tm), jnp.float32)],
        compiler_params=pltpu.CompilerParams(
            dimension_semantics=("parallel", "arbitrary"),
            vmem_limit_bytes=VMEM_LIMIT,
        ),
    )(wT, aT, gamma, beta)


# --------------------------------------------------------------------------
# Kernel 3 (tail): Conv4 GEMM + BN(affine) + LeakyReLU + Conv5(k2,s1,p0).
#   a4T columns are position-major (pos, n), pos = oh*2 + ow, so the conv5
#   group-sum is 4 static lane slices: mul by w5[:, pos] + sublane reduce.
# --------------------------------------------------------------------------
def _tail_kernel(w4_ref, a4_ref, w5_ref, g_ref, b_ref, o_ref):
    n = o_ref.shape[1]
    y = jnp.dot(w4_ref[...], a4_ref[...], preferred_element_type=jnp.float32)
    m = y.shape[1]
    mean = jnp.sum(y, axis=1, keepdims=True) * (1.0 / m)
    cen = y - mean
    var = jnp.sum(cen * cen, axis=1, keepdims=True) * (1.0 / m)
    act = _lrelu(cen * jax.lax.rsqrt(var + EPS) * g_ref[...] + b_ref[...])
    acc = jnp.zeros((1, n), jnp.float32)
    for pos in range(4):                                # static unroll, VPU+XLU
        seg = act[:, pos * n:(pos + 1) * n]             # (C4, N)
        acc = acc + jnp.sum(seg * w5_ref[:, pos:pos + 1], axis=0, keepdims=True)
    o_ref[...] = acc


def conv_tail(w4T, a4T, w5p, gamma, beta):
    c4, k4 = w4T.shape
    _, m4 = a4T.shape
    n = m4 // 4
    return pl.pallas_call(
        _tail_kernel,
        out_shape=jax.ShapeDtypeStruct((1, n), jnp.float32),
        grid=(1,),
        in_specs=[
            pl.BlockSpec((c4, k4), lambda i: (0, 0)),
            pl.BlockSpec((k4, m4), lambda i: (0, 0)),
            pl.BlockSpec((c4, 4), lambda i: (0, 0)),
            pl.BlockSpec((c4, 1), lambda i: (0, 0)),
            pl.BlockSpec((c4, 1), lambda i: (0, 0)),
        ],
        out_specs=pl.BlockSpec((1, n), lambda i: (0, 0)),
        compiler_params=pltpu.CompilerParams(
            dimension_semantics=("arbitrary",),
            vmem_limit_bytes=VMEM_LIMIT,
        ),
    )(w4T, a4T, w5p, gamma, beta)


# --------------------------------------------------------------------------
# Host-side layout glue (pure pad/stack/reshape; channel-major, no transposes)
# --------------------------------------------------------------------------
def im2col_T(x_cnhw, kh, kw, stride, pad):
    """Transposed im2col from CNHW: A^T of shape (kh*kw*Cin, N*Ho*Wo), bf16."""
    c, n, h, w = x_cnhw.shape
    xp = jnp.pad(x_cnhw, ((0, 0), (0, 0), (pad, pad), (pad, pad)))
    ho = (h + 2 * pad - kh) // stride + 1
    wo = (w + 2 * pad - kw) // stride + 1
    cols = [xp[:, :, i:i + stride * ho:stride, j:j + stride * wo:stride]
            for i in range(kh) for j in range(kw)]
    pat = jnp.stack(cols, axis=0)                    # (kh*kw, c, n, ho, wo)
    return pat.reshape(kh * kw * c, n * ho * wo).astype(MATMUL_DTYPE), ho, wo


def prepare_params(params):
    """One-time re-layout (outside jit): OIHW -> (Cout, KH*KW*Cin) bf16, plus
    BN affine params as (C, 1) f32 columns and conv5 as (C4, 4) f32."""
    def wt(w):
        cout, cin, kh, kw = w.shape
        return (jnp.transpose(w, (0, 2, 3, 1))
                .reshape(cout, kh * kw * cin).astype(MATMUL_DTYPE))

    def col(v):
        return v.reshape(-1, 1).astype(jnp.float32)

    c5 = params["w5"].shape[1]
    return {
        "w1T": wt(params["w1"]),
        "w2T": wt(params["w2"]),
        "w3T": wt(params["w3"]),
        "w4T": wt(params["w4"]),
        "w5p": params["w5"][0].reshape(c5, -1).astype(jnp.float32),
        "g2": col(params["gamma2"]), "b2": col(params["beta2"]),
        "g3": col(params["gamma3"]), "b3": col(params["beta3"]),
        "g4": col(params["gamma4"]), "b4": col(params["beta4"]),
    }


# --------------------------------------------------------------------------
# Discriminator forward
# --------------------------------------------------------------------------
def discriminator_forward(x_nchw, p):
    n = x_nchw.shape[0]
    x = jnp.transpose(x_nchw, (1, 0, 2, 3)).astype(MATMUL_DTYPE)   # CNHW bf16

    # Block 1: Conv(4,2,1) + LeakyReLU(0.2)
    aT, ho, wo = im2col_T(x, 4, 4, 2, 1)
    y = conv_gemm_lrelu(p["w1T"], aT)                   # (fm, N*Ho*Wo) bf16
    x = y.reshape(-1, n, ho, wo)                        # CNHW (free reshape)

    # Blocks 2-3: Conv(4,2,1) + BatchNorm2d(batch stats) + LeakyReLU
    for wk, gk, bk in (("w2T", "g2", "b2"), ("w3T", "g3", "b3")):
        aT, ho, wo = im2col_T(x, 4, 4, 2, 1)
        y = conv_gemm_bn_lrelu(p[wk], aT, p[gk], p[bk])
        x = y.reshape(-1, n, ho, wo)

    # Blocks 4-5: Conv(4,2,1)+BN+LeakyReLU and final Conv(2,1,0), one kernel.
    aT, ho, wo = im2col_T(x, 4, 4, 2, 1)                # ho = wo = 2
    assert ho == 2 and wo == 2
    k4 = aT.shape[0]
    # (n, pos) -> (pos, n) column order so conv5 group-sum is lane slices.
    aT = aT.reshape(k4, n, ho * wo).transpose(0, 2, 1).reshape(k4, n * ho * wo)
    out = conv_tail(p["w4T"], aT, p["w5p"], p["g4"], p["b4"])       # (1, N)
    return out.reshape(-1)                              # == .view(-1)


# --------------------------------------------------------------------------
# Pure-JAX reference (f32) for tolerance-asserted correctness check
# --------------------------------------------------------------------------
def _ref_forward(x, params):
    def conv(v, w, stride, pad):
        return jax.lax.conv_general_dilated(
            v, w, (stride, stride), [(pad, pad), (pad, pad)],
            dimension_numbers=("NCHW", "OIHW", "NCHW"))

    def bn(v, g, b):
        mean = jnp.mean(v, axis=(0, 2, 3), keepdims=True)
        var = jnp.var(v, axis=(0, 2, 3), keepdims=True)
        vhat = (v - mean) * jax.lax.rsqrt(var + EPS)
        return vhat * g.reshape(1, -1, 1, 1) + b.reshape(1, -1, 1, 1)

    x = _lrelu(conv(x, params["w1"], 2, 1))
    x = _lrelu(bn(conv(x, params["w2"], 2, 1), params["gamma2"], params["beta2"]))
    x = _lrelu(bn(conv(x, params["w3"], 2, 1), params["gamma3"], params["beta3"]))
    x = _lrelu(bn(conv(x, params["w4"], 2, 1), params["gamma4"], params["beta4"]))
    x = conv(x, params["w5"], 1, 0)
    return x.reshape(-1)


# --------------------------------------------------------------------------
if __name__ == "__main__":
    key = jax.random.PRNGKey(0)
    img_channels, feature_maps = 3, 8
    N, H, W = 2, 32, 32                      # 32 -> 16 -> 8 -> 4 -> 2 -> 1

    keys = jax.random.split(key, 6)

    def init(k, shape):
        return 0.02 * jax.random.normal(k, shape, jnp.float32)

    params = {
        "w1": init(keys[0], (feature_maps,      img_channels,     4, 4)),
        "w2": init(keys[1], (feature_maps * 2,  feature_maps,     4, 4)),
        "w3": init(keys[2], (feature_maps * 4,  feature_maps * 2, 4, 4)),
        "w4": init(keys[3], (feature_maps * 8,  feature_maps * 4, 4, 4)),
        "w5": init(keys[4], (1,                 feature_maps * 8, 2, 2)),
        # BatchNorm2d affine defaults (gamma=1, beta=0)
        "gamma2": jnp.ones((feature_maps * 2,), jnp.float32),
        "beta2":  jnp.zeros((feature_maps * 2,), jnp.float32),
        "gamma3": jnp.ones((feature_maps * 4,), jnp.float32),
        "beta3":  jnp.zeros((feature_maps * 4,), jnp.float32),
        "gamma4": jnp.ones((feature_maps * 8,), jnp.float32),
        "beta4":  jnp.zeros((feature_maps * 8,), jnp.float32),
    }

    imgs = jax.random.normal(keys[5], (N, img_channels, H, W), jnp.float32)

    prepped = prepare_params(params)         # one-time weight re-layout
    out = jax.jit(discriminator_forward)(imgs, prepped)
    jax.block_until_ready(out)
    assert out.shape == (N,), out.shape
    assert bool(jnp.all(jnp.isfinite(out)))

    # Tolerance-asserted check vs. the pure-JAX f32 reference (kernel path
    # uses bf16 GEMM operands / activations, so a loose tolerance).
    ref = jax.jit(_ref_forward)(imgs, params)
    jax.block_until_ready(ref)
    assert bool(jnp.allclose(out, ref, rtol=1e-1, atol=5e-2)), (out, ref)

    print("KERNEL_OK")
</pallas_src>

<mosaic_0001>
module attributes {stable_mosaic.version = 11 : i64} {
  func.func @_gemm_lrelu_kernel(%arg0: i32, %arg1: memref<8x48xbf16, #tpu.memory_space<vmem>>, %arg2: memref<48x512xbf16, #tpu.memory_space<vmem>>, %arg3: memref<8x512xbf16, #tpu.memory_space<vmem>>) attributes {dimension_semantics = [#tpu.dimension_semantics<parallel>], iteration_bounds = array<i64: 1>, scalar_prefetch = 0 : i64, scratch_operands = 0 : i64, tpu.core_type = #tpu.core_type<tc>, window_params = [{pipeline_mode = #tpu.pipeline_mode<synchronous>, transform_indices = @transform_0, window_bounds = array<i64: 8, 48>}, {transform_indices = @transform_1, window_bounds = array<i64: 48, 512>}, {transform_indices = @transform_2, window_bounds = array<i64: 8, 512>}]} {
    %c0 = arith.constant 0 : index
    %c0_0 = arith.constant 0 : index
    %0 = vector.load %arg1[%c0, %c0_0] : memref<8x48xbf16, #tpu.memory_space<vmem>>, vector<8x48xbf16>
    %c0_1 = arith.constant 0 : index
    %c0_2 = arith.constant 0 : index
    %1 = vector.load %arg2[%c0_1, %c0_2] : memref<48x512xbf16, #tpu.memory_space<vmem>>, vector<48x512xbf16>
    %cst = arith.constant dense<0.000000e+00> : vector<8x512xf32>
    %2 = tpu.matmul %0, %1, %cst {dimension_numbers = #tpu.dot_dimension_numbers<[1], [0], [0], [1], [0, 0, 1, 1], [], []>} : vector<8x48xbf16>, vector<48x512xbf16>, vector<8x512xf32> -> vector<8x512xf32>
    %cst_3 = arith.constant 0.000000e+00 : f32
    %3 = vector.broadcast %cst_3 : f32 to vector<8x512xf32>
    %4 = arith.cmpf oge, %2, %3 : vector<8x512xf32>
    %cst_4 = arith.constant 2.000000e-01 : f32
    %5 = vector.broadcast %cst_4 : f32 to vector<8x512xf32>
    %6 = arith.mulf %5, %2 : vector<8x512xf32>
    %7 = arith.select %4, %2, %6 : vector<8x512xi1>, vector<8x512xf32>
    %8 = arith.truncf %7 : vector<8x512xf32> to vector<8x512xbf16>
    %c0_5 = arith.constant 0 : index
    %c0_6 = arith.constant 0 : index
    %9 = vector.load %arg3[%c0_5, %c0_6] : memref<8x512xbf16, #tpu.memory_space<vmem>>, vector<8x512xbf16>
    tpu.vector_store %arg3[%c0_5, %c0_6], %8 {strides = array<i32>} : memref<8x512xbf16, #tpu.memory_space<vmem>>, vector<8x512xbf16>,
    return
  }
  func.func @transform_0(%arg0: i32) -> (i32, i32) {
    %c0_i32 = arith.constant 0 : i32
    %c0_i32_0 = arith.constant 0 : i32
    %c0_i32_1 = arith.constant 0 : i32
    return %c0_i32, %c0_i32_0 : i32, i32
  }
  func.func @transform_1(%arg0: i32) -> (i32, i32) {
    %c0_i32 = arith.constant 0 : i32
    %c0_i32_0 = arith.constant 0 : i32
    return %c0_i32, %arg0 : i32, i32
  }
  func.func @transform_2(%arg0: i32) -> (i32, i32) {
    %c0_i32 = arith.constant 0 : i32
    %c0_i32_0 = arith.constant 0 : i32
    return %c0_i32, %arg0 : i32, i32
  }
}

module attributes {stable_mosaic.version = 11 : i64} {
  func.func @_gemm_bn_lrelu_kernel(%arg0: i32, %arg1: i32, %arg2: memref<16x128xbf16, #tpu.memory_space<vmem>>, %arg3: memref<128x128xbf16, #tpu.memory_space<vmem>>, %arg4: memref<16x1xf32, #tpu.memory_space<vmem>>, %arg5: memref<16x1xf32, #tpu.memory_space<vmem>>, %arg6: memref<16x128xbf16, #tpu.memory_space<vmem>>, %arg7: memref<1x16x128xf32, #tpu.memory_space<vmem>>) attributes {dimension_semantics = [#tpu.dimension_semantics<parallel>, #tpu.dimension_semantics<arbitrary>], iteration_bounds = array<i64: 1, 1>, scalar_prefetch = 0 : i64, scratch_operands = 1 : i64, tpu.core_type = #tpu.core_type<tc>, window_params = [{transform_indices = @transform_0, window_bounds = array<i64: 16, 128>}, {transform_indices = @transform_1, window_bounds = array<i64: 128, 128>}, {transform_indices = @transform_2, window_bounds = array<i64: 16, 1>}, {transform_indices = @transform_3, window_bounds = array<i64: 16, 1>}, {transform_indices = @transform_4, window_bounds = array<i64: 16, 128>}]} {
    %c0 = arith.constant 0 : index
    %c0_0 = arith.constant 0 : index
    %0 = vector.load %arg2[%c0, %c0_0] : memref<16x128xbf16, #tpu.memory_space<vmem>>, vector<16x128xbf16>
    %c0_1 = arith.constant 0 : index
    %c0_2 = arith.constant 0 : index
    %1 = vector.load %arg3[%c0_1, %c0_2] : memref<128x128xbf16, #tpu.memory_space<vmem>>, vector<128x128xbf16>
    %cst = arith.constant dense<0.000000e+00> : vector<16x128xf32>
    %2 = tpu.matmul %0, %1, %cst {dimension_numbers = #tpu.dot_dimension_numbers<[1], [0], [0], [1], [0, 0, 1, 1], [], []>} : vector<16x128xbf16>, vector<128x128xbf16>, vector<16x128xf32> -> vector<16x128xf32>
    %3 = arith.index_cast %arg1 : i32 to index
    %c0_3 = arith.constant 0 : index
    %c0_4 = arith.constant 0 : index
    %4 = vector.load %arg7[%3, %c0_3, %c0_4] : memref<1x16x128xf32, #tpu.memory_space<vmem>>, vector<1x16x128xf32>
    %5 = vector.shape_cast %4 : vector<1x16x128xf32> to vector<16x128xf32>
    %6 = vector.shape_cast %2 : vector<16x128xf32> to vector<1x16x128xf32>
    tpu.vector_store %arg7[%3, %c0_3, %c0_4], %6 {strides = array<i32>} : memref<1x16x128xf32, #tpu.memory_space<vmem>>, vector<1x16x128xf32>,
    %c0_i32 = arith.constant 0 : i32
    %7 = arith.cmpi eq, %arg1, %c0_i32 : i32
    %8 = arith.extui %7 : i1 to i32
    %c0_i32_5 = arith.constant 0 : i32
    %9 = arith.cmpi ne, %8, %c0_i32_5 : i32
    scf.if %9 {
      %c0_6 = arith.constant 0 : index
      %c0_7 = arith.constant 0 : index
      %c0_8 = arith.constant 0 : index
      %10 = vector.load %arg7[%c0_6, %c0_7, %c0_8] : memref<1x16x128xf32, #tpu.memory_space<vmem>>, vector<1x16x128xf32>
      %cst_9 = arith.constant dense<0.000000e+00> : vector<1x16xf32>
      %11 = vector.multi_reduction <add>, %10, %cst_9 [2] : vector<1x16x128xf32> to vector<1x16xf32>
      %12 = vector.shape_cast %11 : vector<1x16xf32> to vector<1x16x1xf32>
      %cst_10 = arith.constant dense<0.000000e+00> : vector<16x1xf32>
      %13 = vector.multi_reduction <add>, %12, %cst_10 [0] : vector<1x16x1xf32> to vector<16x1xf32>
      %14 = vector.shape_cast %13 : vector<16x1xf32> to vector<1x16x1xf32>
      %cst_11 = arith.constant 7.812500e-03 : f32
      %15 = vector.broadcast %cst_11 : f32 to vector<1x16x1xf32>
      %16 = arith.mulf %14, %15 : vector<1x16x1xf32>
      %17 = vector.broadcast %16 : vector<1x16x1xf32> to vector<1x16x128xf32>
      %18 = arith.subf %10, %17 : vector<1x16x128xf32>
      %19 = arith.mulf %18, %18 : vector<1x16x128xf32>
      %cst_12 = arith.constant dense<0.000000e+00> : vector<1x16xf32>
      %20 = vector.multi_reduction <add>, %19, %cst_12 [2] : vector<1x16x128xf32> to vector<1x16xf32>
      %21 = vector.shape_cast %20 : vector<1x16xf32> to vector<1x16x1xf32>
      %cst_13 = arith.constant dense<0.000000e+00> : vector<16x1xf32>
      %22 = vector.multi_reduction <add>, %21, %cst_13 [0] : vector<1x16x1xf32> to vector<16x1xf32>
      %23 = vector.shape_cast %22 : vector<16x1xf32> to vector<1x16x1xf32>
      %cst_14 = arith.constant 7.812500e-03 : f32
      %24 = vector.broadcast %cst_14 : f32 to vector<1x16x1xf32>
      %25 = arith.mulf %23, %24 : vector<1x16x1xf32>
      %cst_15 = arith.constant 9.99999974E-6 : f32
      %26 = vector.broadcast %cst_15 : f32 to vector<1x16x1xf32>
      %27 = arith.addf %25, %26 : vector<1x16x1xf32>
      %28 = math.rsqrt %27 : vector<1x16x1xf32>
      %c0_16 = arith.constant 0 : index
      %c0_17 = arith.constant 0 : index
      %29 = vector.load %arg4[%c0_16, %c0_17] : memref<16x1xf32, #tpu.memory_space<vmem>>, vector<16x1xf32>
      %30 = vector.shape_cast %29 : vector<16x1xf32> to vector<1x16x1xf32>
      %31 = arith.mulf %28, %30 : vector<1x16x1xf32>
      %c0_18 = arith.constant 0 : index
      %c0_19 = arith.constant 0 : index
      %32 = vector.load %arg5[%c0_18, %c0_19] : memref<16x1xf32, #tpu.memory_space<vmem>>, vector<16x1xf32>
      %33 = vector.shape_cast %32 : vector<16x1xf32> to vector<1x16x1xf32>
      %34 = vector.broadcast %31 : vector<1x16x1xf32> to vector<1x16x128xf32>
      %35 = arith.mulf %18, %34 : vector<1x16x128xf32>
      %36 = vector.broadcast %33 : vector<1x16x1xf32> to vector<1x16x128xf32>
      %37 = arith.addf %35, %36 : vector<1x16x128xf32>
      %cst_20 = arith.constant 0.000000e+00 : f32
      %38 = vector.broadcast %cst_20 : f32 to vector<1x16x128xf32>
      %39 = arith.cmpf oge, %37, %38 : vector<1x16x128xf32>
      %cst_21 = arith.constant 2.000000e-01 : f32
      %40 = vector.broadcast %cst_21 : f32 to vector<1x16x128xf32>
      %41 = arith.mulf %40, %37 : vector<1x16x128xf32>
      %42 = arith.select %39, %37, %41 : vector<1x16x128xi1>, vector<1x16x128xf32>
      %43 = vector.shape_cast %42 : vector<1x16x128xf32> to vector<16x128xf32>
      %44 = arith.truncf %43 : vector<16x128xf32> to vector<16x128xbf16>
      %c0_22 = arith.constant 0 : index
      %c0_23 = arith.constant 0 : index
      %45 = vector.load %arg6[%c0_22, %c0_23] : memref<16x128xbf16, #tpu.memory_space<vmem>>, vector<16x128xbf16>
      tpu.vector_store %arg6[%c0_22, %c0_23], %44 {strides = array<i32>} : memref<16x128xbf16, #tpu.memory_space<vmem>>, vector<16x128xbf16>,
    } else {
    }
    return
  }
  func.func @transform_0(%arg0: i32, %arg1: i32) -> (i32, i32) {
    %c0_i32 = arith.constant 0 : i32
    %c0_i32_0 = arith.constant 0 : i32
    return %arg0, %c0_i32 : i32, i32
  }
  func.func @transform_1(%arg0: i32, %arg1: i32) -> (i32, i32) {
    %c0_i32 = arith.constant 0 : i32
    %c0_i32_0 = arith.constant 0 : i32
    return %c0_i32, %arg1 : i32, i32
  }
  func.func @transform_2(%arg0: i32, %arg1: i32) -> (i32, i32) {
    %c0_i32 = arith.constant 0 : i32
    %c0_i32_0 = arith.constant 0 : i32
    return %arg0, %c0_i32 : i32, i32
  }
  func.func @transform_3(%arg0: i32, %arg1: i32) -> (i32, i32) {
    %c0_i32 = arith.constant 0 : i32
    %c0_i32_0 = arith.constant 0 : i32
    return %arg0, %c0_i32 : i32, i32
  }
  func.func @transform_4(%arg0: i32, %arg1: i32) -> (i32, i32) {
    %c0_i32 = arith.constant 0 : i32
    %c0_i32_0 = arith.constant 0 : i32
    return %arg0, %c0_i32 : i32, i32
  }
}

module attributes {stable_mosaic.version = 11 : i64} {
  func.func @_gemm_bn_lrelu_kernel(%arg0: i32, %arg1: i32, %arg2: memref<16x256xbf16, #tpu.memory_space<vmem>>, %arg3: memref<256x32xbf16, #tpu.memory_space<vmem>>, %arg4: memref<16x1xf32, #tpu.memory_space<vmem>>, %arg5: memref<16x1xf32, #tpu.memory_space<vmem>>, %arg6: memref<16x32xbf16, #tpu.memory_space<vmem>>, %arg7: memref<1x16x32xf32, #tpu.memory_space<vmem>>) attributes {dimension_semantics = [#tpu.dimension_semantics<parallel>, #tpu.dimension_semantics<arbitrary>], iteration_bounds = array<i64: 2, 1>, scalar_prefetch = 0 : i64, scratch_operands = 1 : i64, tpu.core_type = #tpu.core_type<tc>, window_params = [{transform_indices = @transform_0, window_bounds = array<i64: 16, 256>}, {transform_indices = @transform_1, window_bounds = array<i64: 256, 32>}, {transform_indices = @transform_2, window_bounds = array<i64: 16, 1>}, {transform_indices = @transform_3, window_bounds = array<i64: 16, 1>}, {transform_indices = @transform_4, window_bounds = array<i64: 16, 32>}]} {
    %c0 = arith.constant 0 : index
    %c0_0 = arith.constant 0 : index
    %0 = vector.load %arg2[%c0, %c0_0] : memref<16x256xbf16, #tpu.memory_space<vmem>>, vector<16x256xbf16>
    %c0_1 = arith.constant 0 : index
    %c0_2 = arith.constant 0 : index
    %1 = vector.load %arg3[%c0_1, %c0_2] : memref<256x32xbf16, #tpu.memory_space<vmem>>, vector<256x32xbf16>
    %cst = arith.constant dense<0.000000e+00> : vector<16x32xf32>
    %2 = tpu.matmul %0, %1, %cst {dimension_numbers = #tpu.dot_dimension_numbers<[1], [0], [0], [1], [0, 0, 1, 1], [], []>} : vector<16x256xbf16>, vector<256x32xbf16>, vector<16x32xf32> -> vector<16x32xf32>
    %3 = arith.index_cast %arg1 : i32 to index
    %c0_3 = arith.constant 0 : index
    %c0_4 = arith.constant 0 : index
    %4 = vector.load %arg7[%3, %c0_3, %c0_4] : memref<1x16x32xf32, #tpu.memory_space<vmem>>, vector<1x16x32xf32>
    %5 = vector.shape_cast %4 : vector<1x16x32xf32> to vector<16x32xf32>
    %6 = vector.shape_cast %2 : vector<16x32xf32> to vector<1x16x32xf32>
    tpu.vector_store %arg7[%3, %c0_3, %c0_4], %6 {strides = array<i32>} : memref<1x16x32xf32, #tpu.memory_space<vmem>>, vector<1x16x32xf32>,
    %c0_i32 = arith.constant 0 : i32
    %7 = arith.cmpi eq, %arg1, %c0_i32 : i32
    %8 = arith.extui %7 : i1 to i32
    %c0_i32_5 = arith.constant 0 : i32
    %9 = arith.cmpi ne, %8, %c0_i32_5 : i32
    scf.if %9 {
      %c0_6 = arith.constant 0 : index
      %c0_7 = arith.constant 0 : index
      %c0_8 = arith.constant 0 : index
      %10 = vector.load %arg7[%c0_6, %c0_7, %c0_8] : memref<1x16x32xf32, #tpu.memory_space<vmem>>, vector<1x16x32xf32>
      %cst_9 = arith.constant dense<0.000000e+00> : vector<1x16xf32>
      %11 = vector.multi_reduction <add>, %10, %cst_9 [2] : vector<1x16x32xf32> to vector<1x16xf32>
      %12 = vector.shape_cast %11 : vector<1x16xf32> to vector<1x16x1xf32>
      %cst_10 = arith.constant dense<0.000000e+00> : vector<16x1xf32>
      %13 = vector.multi_reduction <add>, %12, %cst_10 [0] : vector<1x16x1xf32> to vector<16x1xf32>
      %14 = vector.shape_cast %13 : vector<16x1xf32> to vector<1x16x1xf32>
      %cst_11 = arith.constant 3.125000e-02 : f32
      %15 = vector.broadcast %cst_11 : f32 to vector<1x16x1xf32>
      %16 = arith.mulf %14, %15 : vector<1x16x1xf32>
      %17 = vector.broadcast %16 : vector<1x16x1xf32> to vector<1x16x32xf32>
      %18 = arith.subf %10, %17 : vector<1x16x32xf32>
      %19 = arith.mulf %18, %18 : vector<1x16x32xf32>
      %cst_12 = arith.constant dense<0.000000e+00> : vector<1x16xf32>
      %20 = vector.multi_reduction <add>, %19, %cst_12 [2] : vector<1x16x32xf32> to vector<1x16xf32>
      %21 = vector.shape_cast %20 : vector<1x16xf32> to vector<1x16x1xf32>
      %cst_13 = arith.constant dense<0.000000e+00> : vector<16x1xf32>
      %22 = vector.multi_reduction <add>, %21, %cst_13 [0] : vector<1x16x1xf32> to vector<16x1xf32>
      %23 = vector.shape_cast %22 : vector<16x1xf32> to vector<1x16x1xf32>
      %cst_14 = arith.constant 3.125000e-02 : f32
      %24 = vector.broadcast %cst_14 : f32 to vector<1x16x1xf32>
      %25 = arith.mulf %23, %24 : vector<1x16x1xf32>
      %cst_15 = arith.constant 9.99999974E-6 : f32
      %26 = vector.broadcast %cst_15 : f32 to vector<1x16x1xf32>
      %27 = arith.addf %25, %26 : vector<1x16x1xf32>
      %28 = math.rsqrt %27 : vector<1x16x1xf32>
      %c0_16 = arith.constant 0 : index
      %c0_17 = arith.constant 0 : index
      %29 = vector.load %arg4[%c0_16, %c0_17] : memref<16x1xf32, #tpu.memory_space<vmem>>, vector<16x1xf32>
      %30 = vector.shape_cast %29 : vector<16x1xf32> to vector<1x16x1xf32>
      %31 = arith.mulf %28, %30 : vector<1x16x1xf32>
      %c0_18 = arith.constant 0 : index
      %c0_19 = arith.constant 0 : index
      %32 = vector.load %arg5[%c0_18, %c0_19] : memref<16x1xf32, #tpu.memory_space<vmem>>, vector<16x1xf32>
      %33 = vector.shape_cast %32 : vector<16x1xf32> to vector<1x16x1xf32>
      %34 = vector.broadcast %31 : vector<1x16x1xf32> to vector<1x16x32xf32>
      %35 = arith.mulf %18, %34 : vector<1x16x32xf32>
      %36 = vector.broadcast %33 : vector<1x16x1xf32> to vector<1x16x32xf32>
      %37 = arith.addf %35, %36 : vector<1x16x32xf32>
      %cst_20 = arith.constant 0.000000e+00 : f32
      %38 = vector.broadcast %cst_20 : f32 to vector<1x16x32xf32>
      %39 = arith.cmpf oge, %37, %38 : vector<1x16x32xf32>
      %cst_21 = arith.constant 2.000000e-01 : f32
      %40 = vector.broadcast %cst_21 : f32 to vector<1x16x32xf32>
      %41 = arith.mulf %40, %37 : vector<1x16x32xf32>
      %42 = arith.select %39, %37, %41 : vector<1x16x32xi1>, vector<1x16x32xf32>
      %43 = vector.shape_cast %42 : vector<1x16x32xf32> to vector<16x32xf32>
      %44 = arith.truncf %43 : vector<16x32xf32> to vector<16x32xbf16>
      %c0_22 = arith.constant 0 : index
      %c0_23 = arith.constant 0 : index
      %45 = vector.load %arg6[%c0_22, %c0_23] : memref<16x32xbf16, #tpu.memory_space<vmem>>, vector<16x32xbf16>
      tpu.vector_store %arg6[%c0_22, %c0_23], %44 {strides = array<i32>} : memref<16x32xbf16, #tpu.memory_space<vmem>>, vector<16x32xbf16>,
    } else {
    }
    return
  }
  func.func @transform_0(%arg0: i32, %arg1: i32) -> (i32, i32) {
    %c0_i32 = arith.constant 0 : i32
    %c0_i32_0 = arith.constant 0 : i32
    return %arg0, %c0_i32 : i32, i32
  }
  func.func @transform_1(%arg0: i32, %arg1: i32) -> (i32, i32) {
    %c0_i32 = arith.constant 0 : i32
    %c0_i32_0 = arith.constant 0 : i32
    return %c0_i32, %arg1 : i32, i32
  }
  func.func @transform_2(%arg0: i32, %arg1: i32) -> (i32, i32) {
    %c0_i32 = arith.constant 0 : i32
    %c0_i32_0 = arith.constant 0 : i32
    return %arg0, %c0_i32 : i32, i32
  }
  func.func @transform_3(%arg0: i32, %arg1: i32) -> (i32, i32) {
    %c0_i32 = arith.constant 0 : i32
    %c0_i32_0 = arith.constant 0 : i32
    return %arg0, %c0_i32 : i32, i32
  }
  func.func @transform_4(%arg0: i32, %arg1: i32) -> (i32, i32) {
    %c0_i32 = arith.constant 0 : i32
    %c0_i32_0 = arith.constant 0 : i32
    return %arg0, %c0_i32 : i32, i32
  }
}

module attributes {stable_mosaic.version = 11 : i64} {
  func.func @_tail_kernel(%arg0: i32, %arg1: memref<64x512xbf16, #tpu.memory_space<vmem>>, %arg2: memref<512x8xbf16, #tpu.memory_space<vmem>>, %arg3: memref<64x4xf32, #tpu.memory_space<vmem>>, %arg4: memref<64x1xf32, #tpu.memory_space<vmem>>, %arg5: memref<64x1xf32, #tpu.memory_space<vmem>>, %arg6: memref<1x2xf32, #tpu.memory_space<vmem>>) attributes {dimension_semantics = [#tpu.dimension_semantics<arbitrary>], iteration_bounds = array<i64: 1>, scalar_prefetch = 0 : i64, scratch_operands = 0 : i64, tpu.core_type = #tpu.core_type<tc>, window_params = [{pipeline_mode = #tpu.pipeline_mode<synchronous>, transform_indices = @transform_0, window_bounds = array<i64: 64, 512>}, {pipeline_mode = #tpu.pipeline_mode<synchronous>, transform_indices = @transform_1, window_bounds = array<i64: 512, 8>}, {pipeline_mode = #tpu.pipeline_mode<synchronous>, transform_indices = @transform_2, window_bounds = array<i64: 64, 4>}, {pipeline_mode = #tpu.pipeline_mode<synchronous>, transform_indices = @transform_3, window_bounds = array<i64: 64, 1>}, {pipeline_mode = #tpu.pipeline_mode<synchronous>, transform_indices = @transform_4, window_bounds = array<i64: 64, 1>}, {pipeline_mode = #tpu.pipeline_mode<synchronous>, transform_indices = @transform_5, window_bounds = array<i64: 1, 2>}]} {
    %c0 = arith.constant 0 : index
    %c0_0 = arith.constant 0 : index
    %0 = vector.load %arg1[%c0, %c0_0] : memref<64x512xbf16, #tpu.memory_space<vmem>>, vector<64x512xbf16>
    %c0_1 = arith.constant 0 : index
    %c0_2 = arith.constant 0 : index
    %1 = vector.load %arg2[%c0_1, %c0_2] : memref<512x8xbf16, #tpu.memory_space<vmem>>, vector<512x8xbf16>
    %cst = arith.constant dense<0.000000e+00> : vector<64x8xf32>
    %2 = tpu.matmul %0, %1, %cst {dimension_numbers = #tpu.dot_dimension_numbers<[1], [0], [0], [1], [0, 0, 1, 1], [], []>} : vector<64x512xbf16>, vector<512x8xbf16>, vector<64x8xf32> -> vector<64x8xf32>
    %cst_3 = arith.constant dense<0.000000e+00> : vector<64xf32>
    %3 = vector.multi_reduction <add>, %2, %cst_3 [1] : vector<64x8xf32> to vector<64xf32>
    %4 = vector.shape_cast %3 : vector<64xf32> to vector<64x1xf32>
    %cst_4 = arith.constant 1.250000e-01 : f32
    %5 = vector.broadcast %cst_4 : f32 to vector<64x1xf32>
    %6 = arith.mulf %4, %5 : vector<64x1xf32>
    %7 = vector.broadcast %6 : vector<64x1xf32> to vector<64x8xf32>
    %8 = arith.subf %2, %7 : vector<64x8xf32>
    %9 = arith.mulf %8, %8 : vector<64x8xf32>
    %cst_5 = arith.constant dense<0.000000e+00> : vector<64xf32>
    %10 = vector.multi_reduction <add>, %9, %cst_5 [1] : vector<64x8xf32> to vector<64xf32>
    %11 = vector.shape_cast %10 : vector<64xf32> to vector<64x1xf32>
    %cst_6 = arith.constant 1.250000e-01 : f32
    %12 = vector.broadcast %cst_6 : f32 to vector<64x1xf32>
    %13 = arith.mulf %11, %12 : vector<64x1xf32>
    %cst_7 = arith.constant 9.99999974E-6 : f32
    %14 = vector.broadcast %cst_7 : f32 to vector<64x1xf32>
    %15 = arith.addf %13, %14 : vector<64x1xf32>
    %16 = math.rsqrt %15 : vector<64x1xf32>
    %17 = vector.broadcast %16 : vector<64x1xf32> to vector<64x8xf32>
    %18 = arith.mulf %8, %17 : vector<64x8xf32>
    %c0_8 = arith.constant 0 : index
    %c0_9 = arith.constant 0 : index
    %19 = vector.load %arg4[%c0_8, %c0_9] : memref<64x1xf32, #tpu.memory_space<vmem>>, vector<64x1xf32>
    %20 = vector.broadcast %19 : vector<64x1xf32> to vector<64x8xf32>
    %21 = arith.mulf %18, %20 : vector<64x8xf32>
    %c0_10 = arith.constant 0 : index
    %c0_11 = arith.constant 0 : index
    %22 = vector.load %arg5[%c0_10, %c0_11] : memref<64x1xf32, #tpu.memory_space<vmem>>, vector<64x1xf32>
    %23 = vector.broadcast %22 : vector<64x1xf32> to vector<64x8xf32>
    %24 = arith.addf %21, %23 : vector<64x8xf32>
    %cst_12 = arith.constant 0.000000e+00 : f32
    %25 = vector.broadcast %cst_12 : f32 to vector<64x8xf32>
    %26 = arith.cmpf oge, %24, %25 : vector<64x8xf32>
    %cst_13 = arith.constant 2.000000e-01 : f32
    %27 = vector.broadcast %cst_13 : f32 to vector<64x8xf32>
    %28 = arith.mulf %27, %24 : vector<64x8xf32>
    %29 = arith.select %26, %24, %28 : vector<64x8xi1>, vector<64x8xf32>
    %cst_14 = arith.constant 0.000000e+00 : f32
    %30 = vector.broadcast %cst_14 : f32 to vector<1x2xf32>
    %31 = vector.extract_strided_slice %29 {offsets = [0, 0], sizes = [64, 2], strides = [1, 1]} : vector<64x8xf32> to vector<64x2xf32>
    %c0_15 = arith.constant 0 : index
    %c0_16 = arith.constant 0 : index
    %32 = vector.load %arg3[%c0_15, %c0_16] : memref<64x4xf32, #tpu.memory_space<vmem>>, vector<64x1xf32>
    %33 = vector.broadcast %32 : vector<64x1xf32> to vector<64x2xf32>
    %34 = arith.mulf %31, %33 : vector<64x2xf32>
    %cst_17 = arith.constant dense<0.000000e+00> : vector<2xf32>
    %35 = vector.multi_reduction <add>, %34, %cst_17 [0] : vector<64x2xf32> to vector<2xf32>
    %36 = vector.shape_cast %35 : vector<2xf32> to vector<1x2xf32>
    %37 = arith.addf %30, %36 : vector<1x2xf32>
    %38 = vector.extract_strided_slice %29 {offsets = [0, 2], sizes = [64, 2], strides = [1, 1]} : vector<64x8xf32> to vector<64x2xf32>
    %c0_18 = arith.constant 0 : index
    %c1 = arith.constant 1 : index
    %39 = vector.load %arg3[%c0_18, %c1] : memref<64x4xf32, #tpu.memory_space<vmem>>, vector<64x1xf32>
    %40 = vector.broadcast %39 : vector<64x1xf32> to vector<64x2xf32>
    %41 = arith.mulf %38, %40 : vector<64x2xf32>
    %cst_19 = arith.constant dense<0.000000e+00> : vector<2xf32>
    %42 = vector.multi_reduction <add>, %41, %cst_19 [0] : vector<64x2xf32> to vector<2xf32>
    %43 = vector.shape_cast %42 : vector<2xf32> to vector<1x2xf32>
    %44 = arith.addf %37, %43 : vector<1x2xf32>
    %45 = vector.extract_strided_slice %29 {offsets = [0, 4], sizes = [64, 2], strides = [1, 1]} : vector<64x8xf32> to vector<64x2xf32>
    %c0_20 = arith.constant 0 : index
    %c2 = arith.constant 2 : index
    %46 = vector.load %arg3[%c0_20, %c2] : memref<64x4xf32, #tpu.memory_space<vmem>>, vector<64x1xf32>
    %47 = vector.broadcast %46 : vector<64x1xf32> to vector<64x2xf32>
    %48 = arith.mulf %45, %47 : vector<64x2xf32>
    %cst_21 = arith.constant dense<0.000000e+00> : vector<2xf32>
    %49 = vector.multi_reduction <add>, %48, %cst_21 [0] : vector<64x2xf32> to vector<2xf32>
    %50 = vector.shape_cast %49 : vector<2xf32> to vector<1x2xf32>
    %51 = arith.addf %44, %50 : vector<1x2xf32>
    %52 = vector.extract_strided_slice %29 {offsets = [0, 6], sizes = [64, 2], strides = [1, 1]} : vector<64x8xf32> to vector<64x2xf32>
    %c0_22 = arith.constant 0 : index
    %c3 = arith.constant 3 : index
    %53 = vector.load %arg3[%c0_22, %c3] : memref<64x4xf32, #tpu.memory_space<vmem>>, vector<64x1xf32>
    %54 = vector.broadcast %53 : vector<64x1xf32> to vector<64x2xf32>
    %55 = arith.mulf %52, %54 : vector<64x2xf32>
    %cst_23 = arith.constant dense<0.000000e+00> : vector<2xf32>
    %56 = vector.multi_reduction <add>, %55, %cst_23 [0] : vector<64x2xf32> to vector<2xf32>
    %57 = vector.shape_cast %56 : vector<2xf32> to vector<1x2xf32>
    %58 = arith.addf %51, %57 : vector<1x2xf32>
    %c0_24 = arith.constant 0 : index
    %c0_25 = arith.constant 0 : index
    %59 = vector.load %arg6[%c0_24, %c0_25] : memref<1x2xf32, #tpu.memory_space<vmem>>, vector<1x2xf32>
    tpu.vector_store %arg6[%c0_24, %c0_25], %58 {strides = array<i32>} : memref<1x2xf32, #tpu.memory_space<vmem>>, vector<1x2xf32>,
    return
  }
  func.func @transform_0(%arg0: i32) -> (i32, i32) {
    %c0_i32 = arith.constant 0 : i32
    %c0_i32_0 = arith.constant 0 : i32
    %c0_i32_1 = arith.constant 0 : i32
    return %c0_i32, %c0_i32_0 : i32, i32
  }
  func.func @transform_1(%arg0: i32) -> (i32, i32) {
    %c0_i32 = arith.constant 0 : i32
    %c0_i32_0 = arith.constant 0 : i32
    %c0_i32_1 = arith.constant 0 : i32
    return %c0_i32, %c0_i32_0 : i32, i32
  }
  func.func @transform_2(%arg0: i32) -> (i32, i32) {
    %c0_i32 = arith.constant 0 : i32
    %c0_i32_0 = arith.constant 0 : i32
    %c0_i32_1 = arith.constant 0 : i32
    return %c0_i32, %c0_i32_0 : i32, i32
  }
  func.func @transform_3(%arg0: i32) -> (i32, i32) {
    %c0_i32 = arith.constant 0 : i32
    %c0_i32_0 = arith.constant 0 : i32
    %c0_i32_1 = arith.constant 0 : i32
    return %c0_i32, %c0_i32_0 : i32, i32
  }
  func.func @transform_4(%arg0: i32) -> (i32, i32) {
    %c0_i32 = arith.constant 0 : i32
    %c0_i32_0 = arith.constant 0 : i32
    %c0_i32_1 = arith.constant 0 : i32
    return %c0_i32, %c0_i32_0 : i32, i32
  }
  func.func @transform_5(%arg0: i32) -> (i32, i32) {
    %c0_i32 = arith.constant 0 : i32
    %c0_i32_0 = arith.constant 0 : i32
    %c0_i32_1 = arith.constant 0 : i32
    return %c0_i32, %c0_i32_0 : i32, i32
  }
}

</mosaic_0001>

<bundles_post_ra>
// kernel: discriminator_forward.4
= control target key start
LH: loop header
LB: loop body
LE: loop exit
PB: predicated region body
PF: predicated region fallthrough
CT: control target
= control target key end

     0   :  { %v242_v1 = vmov 0   ;;  %vm85_vm0 = vcmask 392192   ;;  %s303_s1 = inlined_call_operand.vmem [shape: bf16[48,512], index: 1, kind: input, shape index: {}]   ;;  %s304_s0 = inlined_call_operand.vmem [shape: bf16[8,48], index: 0, kind: input, shape index: {}]   ;;  %s305_s2 = inlined_call_operand.vmem [shape: bf16[8,512], index: 2, kind: output, shape index: {}]  }
   0x1   :  { %v224_v0 = vld [vmem:[%s303_s1 + $0x4] ss:$16 sps:$4 sm:$0xff]   ;;  %121 = vmatprep.mubr.bf16.mxu0 %v242_v1  ;;  %162 = vmatprep.mubr.bf16.mxu1 %v242_v1  ;;  %v226_v2 = vld [vmem:[%s303_s1 + $0xc] ss:$16 sps:$4 sm:$0xff]   ;;  %v228_v3 = vld [vmem:[%s303_s1] ss:$16 sps:$4 sm:$0xff]  }
   0x2   :  { %89 = vmatprep.subr.bf16.mxu0 %v224_v0  ;;  %v229_v4 = vld [vmem:[%s303_s1 + $0x8] ss:$16 sps:$4 sm:$0xff]   ;;  %130 = vmatprep.subr.bf16.mxu1 %v226_v2  ;;  %v230_v5 = vld [vmem:[%s303_s1 + $0x24] ss:$16 sps:$4 sm:$0xff]   ;;  %v232_v6 = vld [vmem:[%s303_s1 + $0x2c] ss:$16 sps:$4 sm:$0xff]  }
   0x3   :  { %90 = vmatpush1.bf16.msra.mxu0 %v228_v3  ;;  %131 = vmatpush1.bf16.msra.mxu1 %v229_v4  ;;  %v234_v7 = vld [vmem:[%s303_s1 + $0x20] ss:$16 sps:$4 sm:$0xff]   ;;  %v235_v8 = vld [vmem:[%s303_s1 + $0x28] ss:$16 sps:$4 sm:$0xff]   ;;  %v236_v9 = vld [vmem:[%s303_s1 + $0x44] ss:$16 sps:$4 sm:$0xff]  }
   0x4   :  { %91 = vmatprep.subr.bf16.mxu0 %v230_v5  ;;  %132 = vmatprep.subr.bf16.mxu1 %v232_v6  ;;  %v238_v10 = vld [vmem:[%s303_s1 + $0x4c] ss:$16 sps:$4 sm:$0xff]   ;;  %v240_v11 = vld [vmem:[%s303_s1 + $0x40] ss:$16 sps:$4 sm:$0xff]   ;;  %v241_v12 = vld [vmem:[%s303_s1 + $0x48] ss:$16 sps:$4 sm:$0xff]  }
   0x5   :  { %v12_v13 = vld [vmem:[%s304_s0] sm:$0xf] }
   0x7   :  { %92 = vmatpush1.bf16.msra.mxu0 %v234_v7  ;;  %133 = vmatpush1.bf16.msra.mxu1 %v235_v8 }
   0x8   :  { %93 = vmatprep.subr.bf16.mxu0 %v236_v9  ;;  %134 = vmatprep.subr.bf16.mxu1 %v238_v10 }
   0xb   :  { %94 = vmatpush1.bf16.msra.mxu0 %v240_v11  ;;  %135 = vmatpush1.bf16.msra.mxu1 %v241_v12 }
   0xe   :  { %217 = vmatmul.mubr.msk.bf16.vlgmr.msra.gmra.mrb[0].mxu0 %vm85_vm0, %v12_v13  ;;  %218 = vmatmul.mubr.msk.bf16.vlgmr.msra.gmra.mrb[0].mxu1 %vm85_vm0, %v12_v13 }
  0xe1   :  { %v123_v14 = vpop.f32.mrb[0].mxu0  ;;  %v164_v15 = vpop.f32.mrb[0].mxu1 }
  0xe2   :  { %vm171_vm1 = vcmp.ge.f32.partialorder %v123_v14, 0.0  ;;  %v175_v16 = vmul.f32 0.2, %v123_v14  ;;  %vm173_vm2 = vcmp.ge.f32.partialorder %v164_v15, 0.0  ;;  %v177_v17 = vmul.f32 0.2, %v164_v15 }
  0xe3   :  { %v125_v18 = vpop.f32.mrb[1].mxu0  ;;  %v166_v19 = vpop.f32.mrb[1].mxu1 }
  0xe4   :  { %v179_v20 = vsel %vm171_vm1, %v123_v14, %v175_v16  ;;  %vm172_vm3 = vcmp.ge.f32.partialorder %v125_v18, 0.0  ;;  %v176_v21 = vmul.f32 0.2, %v125_v18  ;;  %v127_v22 = vpop.f32.mrb[2].mxu0  ;;  %v168_v23 = vpop.f32.mrb[2].mxu1  ;;  %v181_v24 = vsel %vm173_vm2, %v164_v15, %v177_v17 }
  0xe5   :  { %vm174_vm4 = vcmp.ge.f32.partialorder %v166_v19, 0.0  ;;  %v178_v25 = vmul.f32 0.2, %v166_v19  ;;  %v128_v26 = vpop.f32.mrb[3].mxu0  ;;  %v169_v27 = vpop.f32.mrb[3].mxu1 }
  0xe6   :  { %v180_v28 = vsel %vm172_vm3, %v125_v18, %v176_v21 }
  0xe7   :  { %v221_v29 = vpack.c.bf16 %v180_v28, %v179_v20  ;;  %v182_v30 = vsel %vm174_vm4, %v166_v19, %v178_v25 }
  0xe8   :  { %v222_v31 = vpack.c.bf16 %v182_v30, %v181_v24 }
  0xe9   :  { %199 = vst [vmem:[%s305_s2] sm:$0xff] %v221_v29 }
  0xea   :  { %200 = vst [vmem:[%s305_s2 + $0x8] sm:$0xff] %v222_v31 }

// kernel: discriminator_forward.5
= control target key start
LH: loop header
LB: loop body
LE: loop exit
PB: predicated region body
PF: predicated region fallthrough
CT: control target
= control target key end

     0   :  { %v280_v0 = vmov 0.0   ;;  %vm281_vm0 = vmmov 0   ;;  %v282_v22 = vmov 0   ;;  %s350_s1 = inlined_call_operand.vmem [shape: bf16[128,128], index: 1, kind: input, shape index: {}]   ;;  %s351_s0 = inlined_call_operand.vmem [shape: bf16[16,128], index: 0, kind: input, shape index: {}]   ;;  %s352_s3 = inlined_call_operand.vmem [shape: f32[16,1], index: 3, kind: input, shape index: {}]   ;;  %s353_s2 = inlined_call_operand.vmem [shape: f32[16,1], index: 2, kind: input, shape index: {}]   ;;  %s354_s4 = inlined_call_operand.vmem [shape: bf16[16,128], index: 4, kind: output, shape index: {}]  }
   0x1   :  { %242 = vmatprep.subr.bf16.mxu0 %v280_v0  ;;  %v267_v1 = vld [vmem:[%s350_s1] sm:$0xff]   ;;  %258 = vmatprep.mubr.msk.bf16.mxu0 %vm281_vm0, %v280_v0  ;;  %v268_v2 = vld [vmem:[%s350_s1 + $0x8] sm:$0xff]   ;;  %v269_v3 = vld [vmem:[%s350_s1 + $0x10] sm:$0xff]  }
   0x2   :  { %243 = vmatpush3.bf16.msra.mxu0 %v267_v1  ;;  %v270_v4 = vld [vmem:[%s350_s1 + $0x18] sm:$0xff]   ;;  %v271_v5 = vld [vmem:[%s350_s1 + $0x20] sm:$0xff]   ;;  %v272_v6 = vld [vmem:[%s350_s1 + $0x28] sm:$0xff]   ;;  %266 = vset.pattern.permute.xlu1 %v282_v22 }
   0x3   :  { %244 = vmatprep.subr.bf16.mxu0 %v280_v0  ;;  %v273_v7 = vld [vmem:[%s350_s1 + $0x30] sm:$0xff]   ;;  %v274_v8 = vld [vmem:[%s350_s1 + $0x38] sm:$0xff]   ;;  %v275_v9 = vld [vmem:[%s351_s0] sm:$0xff]   ;;  %265 = vset.pattern.permute.xlu0 %v282_v22 }
   0x4   :  { %v169_v23 = vld [vmem:[%s352_s3] sm:$0xff]  ;;  %v166_v33 = vld [vmem:[%s353_s2 + $0x8] sm:$0xff] }
   0x5   :  { %v165_v30 = vld [vmem:[%s353_s2] sm:$0xff]  ;;  %v170_v36 = vld [vmem:[%s352_s3 + $0x8] sm:$0xff] }
   0x6   :  { %245 = vmatpush3.bf16.msra.mxu0 %v268_v2 }
   0x7   :  { %246 = vmatprep.subr.bf16.mxu0 %v280_v0 }
   0xa   :  { %247 = vmatpush3.bf16.msra.mxu0 %v269_v3 }
   0xb   :  { %248 = vmatprep.subr.bf16.mxu0 %v280_v0 }
   0xe   :  { %249 = vmatpush3.bf16.msra.mxu0 %v270_v4 }
   0xf   :  { %250 = vmatprep.subr.bf16.mxu0 %v280_v0 }
  0x12   :  { %251 = vmatpush3.bf16.msra.mxu0 %v271_v5 }
  0x13   :  { %252 = vmatprep.subr.bf16.mxu0 %v280_v0 }
  0x16   :  { %253 = vmatpush3.bf16.msra.mxu0 %v272_v6 }
  0x17   :  { %254 = vmatprep.subr.bf16.mxu0 %v280_v0 }
  0x1a   :  { %255 = vmatpush3.bf16.msra.mxu0 %v273_v7 }
  0x1b   :  { %256 = vmatprep.subr.bf16.mxu0 %v280_v0 }
  0x1e   :  { %257 = vmatpush3.bf16.msra.mxu0 %v274_v8 }
  0x21   :  { %259 = vmatmul.mubr.bf16.vlgmr.msra.gmra.mrb[0].mxu0 %v275_v9 }
  0xf4   :  { %v124_v10 = vpop.f32.mrb[0].mxu0 }
  0xf5   :  { %141 = vadd.xlane.f32.xlu0 %v124_v10  ;;  %v260_v11 = vpop.f32.mrb[1].mxu0 }
  0xf6   :  { %v127_v12 = vpop.f32.mrb[2].mxu0 }
  0xf7   :  { %v261_v13 = vpop.f32.mrb[3].mxu0 }
  0xf9   :  { %143 = vadd.xlane.f32.xlu0 %v127_v12 }
 0x182   :  { %v142_v14 = vpop.xlane.xlu0 %141 }
 0x183   :  { %v147_v15 = vmul.f32 0.0078125, %v142_v14 }
 0x185   :  { %v149_v16 = vsub.f32 %v124_v10, %v147_v15 }
 0x186   :  { %v144_v17 = vpop.xlane.xlu0 %143 }
 0x187   :  { %v148_v18 = vmul.f32 0.0078125, %v144_v17  ;;  %v151_v19 = vmul.f32 %v149_v16, %v149_v16 }
 0x189   :  { %v150_v20 = vsub.f32 %v127_v12, %v148_v18  ;;  %153 = vadd.xlane.f32.xlu1 %v151_v19 }
 0x18b   :  { %v152_v21 = vmul.f32 %v150_v20, %v150_v20 }
 0x18d   :  { %155 = vadd.xlane.f32.xlu1 %v152_v21 }
 0x19e   :  { %185 = vperm.xlu1 %266, %v169_v23  }
 0x216   :  { %v154_v24 = vpop.xlane.xlu1 %153 }
 0x217   :  { %v159_v25 = vmul.f32 0.0078125, %v154_v24 }
 0x219   :  { %v161_v26 = vadd.f32 1e-05, %v159_v25 }
 0x21a   :  { %v156_v27 = vpop.xlane.xlu1 %155 }
 0x21b   :  { %276 = vrsqrt.f32 %v161_v26  ;;  %v160_v28 = vmul.f32 0.0078125, %v156_v27 }
 0x21d   :  { %v162_v29 = vadd.f32 1e-05, %v160_v28 }
 0x21e   :  { %v186_v37 = vpop.permute.xlu1 %185 }
 0x21f   :  { %278 = vrsqrt.f32 %v162_v29 }
 0x225   :  { %v277_v31 = vpop.eup %276 }
 0x226   :  { %v167_v32 = vmul.f32 %v277_v31, %v165_v30 }
 0x228   :  { %173 = vperm.xlu0 %265, %v167_v32  }
 0x229   :  { %v279_v34 = vpop.eup %278 }
 0x22a   :  { %v168_v35 = vmul.f32 %v279_v34, %v166_v33 }
 0x22c   :  { %178 = vperm.xlu1 %266, %v168_v35  }
 0x230   :  { %190 = vperm.xlu1 %266, %v170_v36  }
 0x2a7   :  { %v174_v38 = vpop.permute.xlu0 %173 }
 0x2a8   :  { %v181_v39 = vmul.f32 %v174_v38, %v149_v16 }
 0x2aa   :  { %v193_v41 = vadd.f32 %v186_v37, %v181_v39 }
 0x2ab   :  { %v179_v40 = vpop.permute.xlu1 %178 }
 0x2ac   :  { %v182_v42 = vmul.f32 %v179_v40, %v150_v20  ;;  %v197_v44 = vmul.f32 0.2, %v193_v41  ;;  %vm195_vm1 = vcmp.ge.f32.partialorder %v193_v41, 0.0 }
 0x2ae   :  { %v199_v47 = vsel %vm195_vm1, %v193_v41, %v197_v44 }
 0x2af   :  { %v191_v43 = vpop.permute.xlu1 %190 }
 0x2b0   :  { %v194_v45 = vadd.f32 %v191_v43, %v182_v42 }
 0x2b2   :  { %vm196_vm2 = vcmp.ge.f32.partialorder %v194_v45, 0.0  ;;  %v198_v46 = vmul.f32 0.2, %v194_v45 }
 0x2b4   :  { %v200_v48 = vsel %vm196_vm2, %v194_v45, %v198_v46 }
 0x2b5   :  { %v231_v49 = vpack.c.bf16 %v200_v48, %v199_v47 }
 0x2b7   :  { %232 = vst [vmem:[%s354_s4] sm:$0xff] %v231_v49  }

// kernel: discriminator_forward.6
= control target key start
LH: loop header
LB: loop body
LE: loop exit
PB: predicated region body
PF: predicated region fallthrough
CT: control target
= control target key end

     0   :  { %s813_s15 = smov 0   ;;  %s815_s16 = smov 0   ;;  %s915_s0 = inlined_call_operand.vmem [shape: bf16[32,256], index: 0, kind: input, shape index: {}]   ;;  %s916_s1 = inlined_call_operand.vmem [shape: bf16[256,32], index: 1, kind: input, shape index: {}]   ;;  %s917_s2 = inlined_call_operand.vmem [shape: f32[32,1], index: 2, kind: input, shape index: {}]   ;;  %s918_s3 = inlined_call_operand.vmem [shape: f32[32,1], index: 3, kind: input, shape index: {}]   ;;  %s919_s4 = inlined_call_operand.vmem [shape: bf16[32,32], index: 4, kind: output, shape index: {}]  }
   0x1   :  { %s817_s17 = smov 0  }
   0x2 LB: > { %s26_s18 = sadd.s32 1, %s781_s16  ;;  %p656_p0 = scmp.ge.s32.totalorder %s785_s17, 1  ;;  %s785_s17 = sphi %s817_s17, %s14_s17   ;;  %s781_s16 = sphi %s815_s16, %s921_s16   ;;  %s777_s15 = sphi %s813_s15, %s920_s15  }
   0x3   : > { %p28_p1 = scmp.ge.s32.totalorder %s26_s18, 2  ;;  %p207_p2 = scmp.lt.s32.totalorder %s785_s17, 3 }
   0x5   : > { %s923_s18 = smov (%p28_p1, %s26_s18), 0  ;;  %p208_p3 = pnand %p656_p0, %p207_p2 }
   0x6   : > { %v740_v0 = vld [vmem:[%s916_s1 + $0x40] sm:$0xff] (!%p208_p3)   ;;  %s657_s21 = sshll.u32 (!%p208_p3), %s777_s15, 1  ;;  %v742_v2 = vld [vmem:[%s916_s1 + $0x48] sm:$0xff] (!%p208_p3)   ;;  %v744_v4 = vld [vmem:[%s916_s1 + $0x50] sm:$0xff] (!%p208_p3)   ;;  %vm461_vm0 = vcmask (!%p208_p3), 261120   ;;  %v787_v38 = vmov (!%p208_p3), 0  }
   0x7   : > { %211 = sbr.rel (%p208_p3) target bundleno = 715 (0x2cb), region = 36  ;;  %v741_v1 = vld [vmem:[%s916_s1] sm:$0xff] (!%p208_p3)   ;;  %691 = vmatprep.subr.bf16.mxu0 (!%p208_p3), %v740_v0  ;;  %v743_v3 = vld [vmem:[%s916_s1 + $0x8] sm:$0xff] (!%p208_p3)   ;;  %p249_p4 = scmp.lt.s32.totalorder (!%p208_p3), %s657_s21, 3  ;;  %v745_v5 = vld [vmem:[%s916_s1 + $0x10] sm:$0xff] (!%p208_p3)   ;;  %739 = vset.pattern.permute.xlu1 (!%p208_p3), %v787_v38  ;;  %vm542_vm2 = vcmask (!%p208_p3), 257024  }
   0x8   : > { %692 = vmatpush3.bf16.msra.mxu0 (!%p208_p3), %v741_v1  ;;  %v746_v6 = vld [vmem:[%s916_s1 + $0x58] sm:$0xff] (!%p208_p3)   ;;  %v748_v8 = vld [vmem:[%s916_s1 + $0x60] sm:$0xff] (!%p208_p3)   ;;  %v750_v10 = vld [vmem:[%s916_s1 + $0x68] sm:$0xff] (!%p208_p3)   ;;  %738 = vset.pattern.permute.xlu0 (!%p208_p3), %v787_v38 }
   0x9   : > { %693 = vmatprep.subr.bf16.mxu0 (!%p208_p3), %v742_v2  ;;  %v747_v7 = vld [vmem:[%s916_s1 + $0x18] sm:$0xff] (!%p208_p3)   ;;  %v749_v9 = vld [vmem:[%s916_s1 + $0x20] sm:$0xff] (!%p208_p3)   ;;  %v751_v12 = vld [vmem:[%s916_s1 + $0x28] sm:$0xff] (!%p208_p3)  }
   0xa   : > { %v752_v13 = vld [vmem:[%s916_s1 + $0x70] sm:$0xff] (!%p208_p3)   ;;  %v754_v15 = vld [vmem:[%s916_s1 + $0x78] sm:$0xff] (!%p208_p3)  }
   0xb   : > { %v753_v14 = vld [vmem:[%s916_s1 + $0x30] sm:$0xff] (!%p208_p3)   ;;  %v755_v16 = vld [vmem:[%s916_s1 + $0x38] sm:$0xff] (!%p208_p3)  }
   0xc   : > { %694 = vmatpush3.bf16.msra.mxu0 (!%p208_p3), %v743_v3 }
   0xd   : > { %695 = vmatprep.subr.bf16.mxu0 (!%p208_p3), %v744_v4 }
   0xe   : > { %s925_s21 = smov (!%p249_p4, %s657_s21), 3 }
   0xf   : > { %s858_s10 = sshll.u32 %s925_s21, 3 }
  0x10   : > { %696 = vmatpush3.bf16.msra.mxu0 %v745_v5  ;;  %s253_s15 = scalar_lea.vmem %s915_s0, %s858_s10  ;;  %s269_s11 = scalar_lea.vmem %s918_s3, %s858_s10 }
  0x11   : > { %697 = vmatprep.subr.bf16.mxu0 %v746_v6  ;;  %v758_v11 = vld [vmem:[%s253_s15 + $0x4] ss:$8 sps:$4 sm:$0xff]   ;;  %v756_v17 = vld [vmem:[%s253_s15] ss:$8 sps:$4 sm:$0xff]   ;;  %s263_s14 = scalar_lea.vmem %s917_s2, %s858_s10  ;;  %s665_s15 = sshll.u32 %s925_s21, 2 }
  0x12   : > { %450 = vmatprep.mubr.bf16.mxu0 %v758_v11  ;;  %v502_v39 = vld [vmem:[%s269_s11] sm:$0xff]  ;;  %v499_v49 = vld [vmem:[%s263_s14 + $0x8] sm:$0xff]  ;;  %s275_s20 = scalar_lea.vmem %s919_s4, %s665_s15 }
  0x13   : > { %v498_v46 = vld [vmem:[%s263_s14] sm:$0xff]  ;;  %v503_v52 = vld [vmem:[%s269_s11 + $0x8] sm:$0xff] }
  0x14   : > { %698 = vmatpush3.bf16.msra.mxu0 %v747_v7 }
  0x15   : > { %699 = vmatprep.subr.bf16.mxu0 %v748_v8 }
  0x18   : > { %700 = vmatpush3.bf16.msra.mxu0 %v749_v9 }
  0x19   : > { %701 = vmatprep.subr.bf16.mxu0 %v750_v10 }
  0x1c   : > { %702 = vmatpush3.bf16.msra.mxu0 %v751_v12 }
  0x1d   : > { %703 = vmatprep.subr.bf16.mxu0 %v752_v13 }
  0x20   : > { %704 = vmatpush3.bf16.msra.mxu0 %v753_v14 }
  0x21   : > { %705 = vmatprep.subr.bf16.mxu0 %v754_v15 }
  0x24   : > { %706 = vmatpush3.bf16.msra.mxu0 %v755_v16 }
  0x27   : > { %451 = vmatmul.mubr.bf16.vlgmr.msra.gmra.mrb[0].mxu0 %v756_v17 }
  0xfa   : > { %v707_v18 = vpop.f32.mrb[0].mxu0 }
  0xfb   : > { %v708_v19 = vpop.f32.mrb[1].mxu0 }
  0xfc   : > { %v709_v20 = vadd.f32 %v708_v19, %v707_v18  ;;  %v710_v21 = vpop.f32.mrb[2].mxu0 }
  0xfd   : > { %v711_v22 = vpop.f32.mrb[3].mxu0 }
  0xfe   : > { %462 = vst.msk [vmem:[#allocation2] sm:$0xff] %vm461_vm0, %v709_v20  ;;  %v712_v23 = vadd.f32 %v711_v22, %v710_v21 }
 0x100   : > { %463 = vst.msk [vmem:[#allocation2 + $0x8] sm:$0xff] %vm461_vm0, %v712_v23 }
 0x105   : > { %v468_v24 = vld [vmem:[#allocation2] sm:$0xff] }
 0x106   : > { %v470_v25 = vsel %vm461_vm0, %v468_v24, 0.0 }
 0x107   : > { %471 = vadd.xlane.f32.xlu0 %v470_v25  ;;  %v469_v26 = vld [vmem:[#allocation2 + $0x8] sm:$0xff] }
 0x108   : > { %v473_v27 = vsel %vm461_vm0, %v469_v26, 0.0 }
 0x10b   : > { %474 = vadd.xlane.f32.xlu0 %v473_v27 }
 0x194   : > { %v472_v28 = vpop.xlane.xlu0 %471 }
 0x195   : > { %v478_v29 = vmul.f32 0.03125, %v472_v28 }
 0x197   : > { %v480_v30 = vsub.f32 %v468_v24, %v478_v29 }
 0x198   : > { %v475_v31 = vpop.xlane.xlu0 %474 }
 0x199   : > { %v479_v32 = vmul.f32 0.03125, %v475_v31  ;;  %v482_v33 = vmul.f32 %v480_v30, %v480_v30 }
 0x19b   : > { %v481_v34 = vsub.f32 %v469_v26, %v479_v32  ;;  %v484_v35 = vsel %vm461_vm0, %v482_v33, 0.0 }
 0x19c   : > { %485 = vadd.xlane.f32.xlu1 %v484_v35 }
 0x19d   : > { %v483_v36 = vmul.f32 %v481_v34, %v481_v34 }
 0x19f   : > { %v487_v37 = vsel %vm461_vm0, %v483_v36, 0.0 }
 0x1a0   : > { %488 = vadd.xlane.f32.xlu1 %v487_v37 }
 0x1b1   : > { %518 = vperm.xlu1 %739, %v502_v39  }
 0x229   : > { %v486_v40 = vpop.xlane.xlu1 %485 }
 0x22a   : > { %v492_v41 = vmul.f32 0.03125, %v486_v40 }
 0x22c   : > { %v494_v42 = vadd.f32 1e-05, %v492_v41 }
 0x22d   : > { %v489_v43 = vpop.xlane.xlu1 %488 }
 0x22e   : > { %759 = vrsqrt.f32 %v494_v42  ;;  %v493_v44 = vmul.f32 0.03125, %v489_v43 }
 0x230   : > { %v495_v45 = vadd.f32 1e-05, %v493_v44 }
 0x231   : > { %v519_v53 = vpop.permute.xlu1 %518 }
 0x232   : > { %761 = vrsqrt.f32 %v495_v45 }
 0x238   : > { %v760_v47 = vpop.eup %759 }
 0x239   : > { %v500_v48 = vmul.f32 %v760_v47, %v498_v46 }
 0x23b   : > { %506 = vperm.xlu0 %738, %v500_v48  }
 0x23c   : > { %v762_v50 = vpop.eup %761 }
 0x23d   : > { %v501_v51 = vmul.f32 %v762_v50, %v499_v49 }
 0x23f   : > { %511 = vperm.xlu1 %739, %v501_v51  }
 0x243   : > { %523 = vperm.xlu1 %739, %v503_v52  }
 0x2ba   : > { %v507_v54 = vpop.permute.xlu0 %506 }
 0x2bb   : > { %v514_v55 = vmul.f32 %v507_v54, %v480_v30 }
 0x2bd   : > { %v526_v56 = vadd.f32 %v519_v53, %v514_v55 }
 0x2be   : > { %v512_v57 = vpop.permute.xlu1 %511 }
 0x2bf   : > { %vm528_vm1 = vcmp.ge.f32.partialorder %v526_v56, 0.0  ;;  %v530_v58 = vmul.f32 0.2, %v526_v56  ;;  %v515_v60 = vmul.f32 %v512_v57, %v481_v34 }
 0x2c1   : > { %v532_v59 = vsel %vm528_vm1, %v526_v56, %v530_v58 }
 0x2c2   : > { %v689_v61 = vpack.c.bf16 %v532_v59, %v532_v59  ;;  %v524_v62 = vpop.permute.xlu1 %523 }
 0x2c3   : > { %v527_v63 = vadd.f32 %v524_v62, %v515_v60 }
 0x2c4   : > { %543 = vst.msk [vmem:[%s275_s20] sm:$0xf] %vm542_vm2, %v689_v61 }
 0x2c5   : > { %vm529_vm3 = vcmp.ge.f32.partialorder %v527_v63, 0.0  ;;  %v531_v0 = vmul.f32 0.2, %v527_v63 }
 0x2c7   : > { %v533_v1 = vsel %vm529_vm3, %v527_v63, %v531_v0 }
 0x2c8   : > { %v690_v2 = vpack.c.bf16 %v533_v1, %v533_v1 }
 0x2ca   : > { %544 = vst.msk [vmem:[%s275_s20 + $0x4] sm:$0xf] %vm542_vm2, %v690_v2 }
 0x2cb PF: > { %s14_s17 = sadd.s32 1, %s785_s17   ;;  %s920_s15 = smov %s781_s16 }
 0x2cc   : > { %p11_p5 = scmp.ge.s32.totalorder %s14_s17, 4   ;;  %s921_s16 = smov %s923_s18 }
 0x2ce   :  { %13 = sbr.rel (!%p11_p5) target bundleno = 2 (0x2), region = 80 }

// kernel: discriminator_forward.7
= control target key start
LH: loop header
LB: loop body
LE: loop exit
PB: predicated region body
PF: predicated region fallthrough
CT: control target
= control target key end

     0   :  { %v1298_v2 = vmov 0   ;;  %s1877_s0 = inlined_call_operand.vmem [shape: bf16[64,512], index: 0, kind: input, shape index: {}]   ;;  %s1878_s1 = inlined_call_operand.vmem [shape: bf16[512,8], index: 1, kind: input, shape index: {}]   ;;  %s1879_s2 = inlined_call_operand.vmem [shape: f32[64,4], index: 2, kind: input, shape index: {}]   ;;  %s1880_s3 = inlined_call_operand.vmem [shape: f32[64,1], index: 3, kind: input, shape index: {}]   ;;  %s1881_s4 = inlined_call_operand.vmem [shape: f32[64,1], index: 4, kind: input, shape index: {}]   ;;  %s1882_s5 = inlined_call_operand.hbm [shape: f32[1,2], index: 5, kind: output, shape index: {}]  }
   0x1   :  { %v1202_v0 = vld [vmem:[%s1878_s1 + $0x40] sm:$0xff]   ;;  %1178 = vset.pattern.permute.xlu1 %v1298_v2  ;;  %1177 = vset.pattern.permute.xlu0 %v1298_v2  ;;  %v1206_v5 = vld [vmem:[%s1878_s1 + $0x48] sm:$0xff]   ;;  %v1210_v9 = vld [vmem:[%s1878_s1 + $0x50] sm:$0xff]  }
   0x2   :  { %v1203_v1 = vld [vmem:[%s1878_s1 + $0xc0] sm:$0xff]   ;;  %1089 = vmatprep.subr.bf16.mxu0 %v1202_v0  ;;  %v1207_v6 = vld [vmem:[%s1878_s1 + $0xc8] sm:$0xff]   ;;  %v1211_v10 = vld [vmem:[%s1878_s1 + $0xd0] sm:$0xff]  }
   0x3   :  { %v1204_v3 = vld [vmem:[%s1878_s1] sm:$0xff]   ;;  %1129 = vmatprep.subr.bf16.mxu1 %v1203_v1  ;;  %v1208_v7 = vld [vmem:[%s1878_s1 + $0x8] sm:$0xff]   ;;  %v1212_v11 = vld [vmem:[%s1878_s1 + $0x10] sm:$0xff]  }
   0x4   :  { %v1205_v4 = vld [vmem:[%s1878_s1 + $0x80] sm:$0xff]   ;;  %1090 = vmatpush3.bf16.msra.mxu0 %v1204_v3  ;;  %v1209_v8 = vld [vmem:[%s1878_s1 + $0x88] sm:$0xff]   ;;  %v1213_v12 = vld [vmem:[%s1878_s1 + $0x90] sm:$0xff]  }
   0x5   :  { %1130 = vmatpush3.bf16.msra.mxu1 %v1205_v4  ;;  %1091 = vmatprep.subr.bf16.mxu0 %v1206_v5  ;;  %v1214_v13 = vld [vmem:[%s1878_s1 + $0x58] sm:$0xff]   ;;  %v1218_v17 = vld [vmem:[%s1878_s1 + $0x60] sm:$0xff]   ;;  %v1222_v21 = vld [vmem:[%s1878_s1 + $0x68] sm:$0xff]  }
   0x6   :  { %1131 = vmatprep.subr.bf16.mxu1 %v1207_v6  ;;  %v1215_v14 = vld [vmem:[%s1878_s1 + $0xd8] sm:$0xff]   ;;  %v1219_v18 = vld [vmem:[%s1878_s1 + $0xe0] sm:$0xff]   ;;  %v1223_v22 = vld [vmem:[%s1878_s1 + $0xe8] sm:$0xff]  }
   0x7   :  { %v1216_v15 = vld [vmem:[%s1878_s1 + $0x18] sm:$0xff]   ;;  %v1220_v19 = vld [vmem:[%s1878_s1 + $0x20] sm:$0xff]   ;;  %v1224_v23 = vld [vmem:[%s1878_s1 + $0x28] sm:$0xff]  }
   0x8   :  { %1092 = vmatpush3.bf16.msra.mxu0 %v1208_v7  ;;  %v1217_v16 = vld [vmem:[%s1878_s1 + $0x98] sm:$0xff]   ;;  %v1221_v20 = vld [vmem:[%s1878_s1 + $0xa0] sm:$0xff]   ;;  %v1225_v24 = vld [vmem:[%s1878_s1 + $0xa8] sm:$0xff]  }
   0x9   :  { %1132 = vmatpush3.bf16.msra.mxu1 %v1209_v8  ;;  %1093 = vmatprep.subr.bf16.mxu0 %v1210_v9  ;;  %v1226_v25 = vld [vmem:[%s1878_s1 + $0x70] sm:$0xff]   ;;  %v1230_v29 = vld [vmem:[%s1878_s1 + $0x78] sm:$0xff]   ;;  %v610_v43 = vld [vmem:[%s1880_s3 + $0x8] sm:$0xff] }
   0xa   :  { %1133 = vmatprep.subr.bf16.mxu1 %v1211_v10  ;;  %v1227_v26 = vld [vmem:[%s1878_s1 + $0xf0] sm:$0xff]   ;;  %v1231_v30 = vld [vmem:[%s1878_s1 + $0xf8] sm:$0xff]   ;;  %624 = vperm.xlu1 %1178, %v610_v43   ;;  %v609_v45 = vld [vmem:[%s1880_s3] sm:$0xff] }
   0xb   :  { %v1228_v27 = vld [vmem:[%s1878_s1 + $0x30] sm:$0xff]   ;;  %v1232_v31 = vld [vmem:[%s1878_s1 + $0x38] sm:$0xff]   ;;  %619 = vperm.xlu0 %1177, %v609_v45   ;;  %v666_v50 = vld [vmem:[%s1881_s4 + $0x8] sm:$0xff] }
   0xc   :  { %1094 = vmatpush3.bf16.msra.mxu0 %v1212_v11  ;;  %v1229_v28 = vld [vmem:[%s1878_s1 + $0xb0] sm:$0xff]   ;;  %v1233_v32 = vld [vmem:[%s1878_s1 + $0xb8] sm:$0xff]  }
   0xd   :  { %1134 = vmatpush3.bf16.msra.mxu1 %v1213_v12  ;;  %1095 = vmatprep.subr.bf16.mxu0 %v1214_v13  ;;  %v1234_v33 = vld [vmem:[%s1877_s0] ss:$16 sps:$4 sm:$0xff]   ;;  %v1236_v34 = vld [vmem:[%s1877_s0 + $0x4] ss:$16 sps:$4 sm:$0xff]   ;;  %v1237_v35 = vld [vmem:[%s1877_s0 + $0x8] ss:$16 sps:$4 sm:$0xff]  }
   0xe   :  { %1135 = vmatprep.subr.bf16.mxu1 %v1215_v14  ;;  %v1239_v36 = vld [vmem:[%s1877_s0 + $0xc] ss:$16 sps:$4 sm:$0xff]   ;;  %406 = vmatprep.mubr.bf16.mxu0 %v1236_v34  ;;  %v1240_v37 = vld [vmem:[%s1877_s0 + $0x24] ss:$16 sps:$4 sm:$0xff]   ;;  %v1244_v39 = vld [vmem:[%s1877_s0 + $0x20] ss:$16 sps:$4 sm:$0xff]  }
   0xf   :  { %471 = vmatprep.mubr.bf16.mxu1 %v1239_v36  ;;  %v1242_v38 = vld [vmem:[%s1877_s0 + $0x2c] ss:$16 sps:$4 sm:$0xff]   ;;  %v1245_v40 = vld [vmem:[%s1877_s0 + $0x28] ss:$16 sps:$4 sm:$0xff]   ;;  %v1246_v41 = vld [vmem:[%s1877_s0 + $0x44] ss:$16 sps:$4 sm:$0xff]  }
  0x10   :  { %1096 = vmatpush3.bf16.msra.mxu0 %v1216_v15  ;;  %v1248_v42 = vld [vmem:[%s1877_s0 + $0x4c] ss:$16 sps:$4 sm:$0xff]   ;;  %v611_v44 = vld [vmem:[%s1880_s3 + $0x10] sm:$0xff]  ;;  %v1251_v47 = vld [vmem:[%s1877_s0 + $0x48] ss:$16 sps:$4 sm:$0xff]  }
  0x11   :  { %1136 = vmatpush3.bf16.msra.mxu1 %v1217_v16  ;;  %1097 = vmatprep.subr.bf16.mxu0 %v1218_v17  ;;  %v1250_v46 = vld [vmem:[%s1877_s0 + $0x40] ss:$16 sps:$4 sm:$0xff]   ;;  %v612_v48 = vld [vmem:[%s1880_s3 + $0x18] sm:$0xff]  ;;  %v1252_v49 = vld [vmem:[%s1877_s0 + $0x64] ss:$16 sps:$4 sm:$0xff]  }
  0x12   :  { %1137 = vmatprep.subr.bf16.mxu1 %v1219_v18  ;;  %629 = vperm.xlu1 %1178, %v611_v44  }
  0x14   :  { %1098 = vmatpush3.bf16.msra.mxu0 %v1220_v19 }
  0x15   :  { %1138 = vmatpush3.bf16.msra.mxu1 %v1221_v20  ;;  %1099 = vmatprep.subr.bf16.mxu0 %v1222_v21 }
  0x16   :  { %1139 = vmatprep.subr.bf16.mxu1 %v1223_v22 }
  0x18   :  { %1100 = vmatpush3.bf16.msra.mxu0 %v1224_v23 }
  0x19   :  { %1140 = vmatpush3.bf16.msra.mxu1 %v1225_v24  ;;  %1101 = vmatprep.subr.bf16.mxu0 %v1226_v25 }
  0x1a   :  { %1141 = vmatprep.subr.bf16.mxu1 %v1227_v26 }
  0x1c   :  { %1102 = vmatpush3.bf16.msra.mxu0 %v1228_v27 }
  0x1d   :  { %1142 = vmatpush3.bf16.msra.mxu1 %v1229_v28  ;;  %1103 = vmatprep.subr.bf16.mxu0 %v1230_v29 }
  0x1e   :  { %1143 = vmatprep.subr.bf16.mxu1 %v1231_v30 }
  0x20   :  { %1104 = vmatpush3.bf16.msra.mxu0 %v1232_v31 }
  0x21   :  { %1144 = vmatpush3.bf16.msra.mxu1 %v1233_v32 }
  0x23   :  { %407 = vmatmul.mubr.bf16.vlgmr.msra.gmra.mrb[0].mxu0 %v1234_v33 }
  0x24   :  { %472 = vmatmul.mubr.bf16.vlgmr.msra.gmra.mrb[0].mxu1 %v1237_v35  ;;  %414 = vmatprep.mubr.bf16.mxu0 %v1240_v37 }
  0x25   :  { %479 = vmatprep.mubr.bf16.mxu1 %v1242_v38 }
  0x2b   :  { %415 = vmatmul.mubr.bf16.gmra.mrb[4].mxu0 %v1244_v39 }
  0x2c   :  { %480 = vmatmul.mubr.bf16.gmra.mrb[4].mxu1 %v1245_v40  ;;  %422 = vmatprep.mubr.bf16.mxu0 %v1246_v41 }
  0x2d   :  { %487 = vmatprep.mubr.bf16.mxu1 %v1248_v42 }
  0x2e   :  { %10 = vsyncpa [#allocation3], 0  ;;  %v1254_v51 = vld [vmem:[%s1877_s0 + $0x6c] ss:$16 sps:$4 sm:$0xff]   ;;  %634 = vperm.xlu1 %1178, %v612_v48   ;;  %v613_v52 = vld [vmem:[%s1880_s3 + $0x20] sm:$0xff]  ;;  %680 = vperm.xlu0 %1177, %v666_v50   ;;  %v1299_v59 = vmov 2  }
  0x2f   :  { %v668_v53 = vld [vmem:[%s1881_s4 + $0x18] sm:$0xff]  ;;  %v1256_v54 = vld [vmem:[%s1877_s0 + $0x60] ss:$16 sps:$4 sm:$0xff]   ;;  %v614_v55 = vld [vmem:[%s1880_s3 + $0x28] sm:$0xff]  ;;  %v1300_v0 = vmov 1   ;;  %v1301_v6 = vmov 3  }
  0x30   :  { %v1257_v56 = vld [vmem:[%s1877_s0 + $0x68] ss:$16 sps:$4 sm:$0xff]   ;;  %v615_v57 = vld [vmem:[%s1880_s3 + $0x30] sm:$0xff]  ;;  %v1512_v58 = vld [vmem:[%s1879_s2] sm:$0xff]  ;;  %vm504_vm0 = vcmask 64512   ;;  %vm864_vm4 = vcmask 31760  }
  0x31   :  { %v1519_v60 = vld [vmem:[%s1879_s2 + $0x18] sm:$0xff]  ;;  %v665_v62 = vld [vmem:[%s1881_s4] sm:$0xff]  ;;  %v1531_v63 = vld [vmem:[%s1879_s2 + $0x8] sm:$0xff]  ;;  %vm931_vm6 = vcmask 48160   ;;  %vm998_vm7 = vcmask 64560   ;;  %vm801_vm8 = vcmask 15360  }
  0x32   :  { %639 = vperm.xlu1 %1178, %v613_v52   ;;  %690 = vperm.xlu0 %1177, %v668_v53   ;;  %v616_v61 = vld [vmem:[%s1880_s3 + $0x38] sm:$0xff]  ;;  %v667_v1 = vld [vmem:[%s1881_s4 + $0x10] sm:$0xff]  ;;  %v669_v3 = vld [vmem:[%s1881_s4 + $0x20] sm:$0xff]  ;;  %s1303_s6 = smov 126   ;;  %s1304_s7 = smov 122   ;;  %vm1025_vm13 = vcmask 8192  }
  0x33   :  { %423 = vmatmul.mubr.bf16.gmra.mrb[8].mxu0 %v1250_v46  ;;  %v1548_v4 = vld [vmem:[%s1879_s2 + $0x10] sm:$0xff]  ;;  %v670_v5 = vld [vmem:[%s1881_s4 + $0x28] sm:$0xff]  ;;  %v1569_v8 = vld [vmem:[%s1879_s2 + $0x20] sm:$0xff]  ;;  %s1305_s8 = smov [#allocation2]  }
  0x34   :  { %488 = vmatmul.mubr.bf16.gmra.mrb[8].mxu1 %v1251_v47  ;;  %430 = vmatprep.mubr.bf16.mxu0 %v1252_v49  ;;  %v671_v7 = vld [vmem:[%s1881_s4 + $0x30] sm:$0xff]  ;;  %v672_v9 = vld [vmem:[%s1881_s4 + $0x38] sm:$0xff]  ;;  %s1033_s0 = sshll.u32 %s1305_s8, 4  ;;  %s1034_s0 = int_to_ptr.vmem [resolvable:$true] %s1033_s0 }
  0x35   :  { %495 = vmatprep.mubr.bf16.mxu1 %v1254_v51  ;;  %s1274_s9 = scalar_lea.vmem %s1034_s0, 16  ;;  %s1278_s10 = scalar_lea.vmem %s1034_s0, 32 }
  0x36   :  { %644 = vperm.xlu1 %1178, %v614_v55   ;;  %1182 = vset.pattern.permute.xlu0 %v1299_v59  ;;  %p1275_p0 = scmp.ne.s32.totalorder %s1034_s0, %s1274_s9  ;;  %p1279_p1 = scmp.lt.s32.totalorder %s1034_s0, %s1034_s0 }
  0x37   :  { %892 = vperm.xlu0 %1182, %v1512_v58   ;;  %p1280_p2 = scmp.lt.s32.totalorder %s1278_s10, %s1274_s9 }
  0x39   :  { %p1281_p3 = por %p1280_p2, %p1279_p1 }
  0x3a   :  { %649 = vperm.xlu1 %1178, %v615_v57  }
  0x3b   :  { %431 = vmatmul.mubr.bf16.gmra.mrb[12].mxu0 %v1256_v54  ;;  %904 = vperm.xlu0 %1182, %v1519_v60   ;;  %p1282_p4 = pnand %p1281_p3, %p1275_p0 }
  0x3c   :  { %496 = vmatmul.mubr.bf16.gmra.mrb[12].mxu1 %v1257_v56 }
  0x3e   :  { %654 = vperm.xlu1 %1178, %v616_v61  }
  0x3f   :  { %1189 = vset.pattern.permute.xlu0 %v1300_v0 }
  0x40   :  { %829 = vperm.xlu0 %1189, %v1531_v63  }
  0x42   :  { %675 = vperm.xlu1 %1178, %v665_v62  }
  0x44   :  { %837 = vperm.xlu0 %1189, %v1519_v60  }
  0x46   :  { %685 = vperm.xlu1 %1178, %v667_v1  }
  0x4a   :  { %1179 = vset.pattern.permute.xlu1 %v1300_v0 }
  0x4b   :  { %825 = vperm.xlu1 %1179, %v1512_v58  }
  0x4f   :  { %1180 = vset.pattern.permute.xlu1 %v1298_v2 }
  0x50   :  { %695 = vperm.xlu1 %1180, %v669_v3  }
  0x54   :  { %1181 = vset.pattern.permute.xlu1 %v1300_v0 }
  0x55   :  { %833 = vperm.xlu1 %1181, %v1548_v4  }
  0x59   :  { %1183 = vset.pattern.permute.xlu1 %v1299_v59 }
  0x5a   :  { %896 = vperm.xlu1 %1183, %v1531_v63  }
  0x5e   :  { %1184 = vset.pattern.permute.xlu1 %v1298_v2 }
  0x5f   :  { %700 = vperm.xlu1 %1184, %v670_v5  }
  0x63   :  { %1185 = vset.pattern.permute.xlu1 %v1299_v59 }
  0x64   :  { %900 = vperm.xlu1 %1185, %v1548_v4  }
  0x68   :  { %1186 = vset.pattern.permute.xlu1 %v1301_v6 }
  0x69   :  { %959 = vperm.xlu1 %1186, %v1512_v58  }
  0x6d   :  { %1187 = vset.pattern.permute.xlu1 %v1298_v2 }
  0x6e   :  { %705 = vperm.xlu1 %1187, %v671_v7  }
  0x72   :  { %1188 = vset.pattern.permute.xlu1 %v1300_v0 }
  0x73   :  { %841 = vperm.xlu1 %1188, %v1569_v8  }
  0x77   :  { %1190 = vset.pattern.permute.xlu1 %v1301_v6 }
  0x78   :  { %967 = vperm.xlu1 %1190, %v1548_v4  }
  0x7c   :  { %1191 = vset.pattern.permute.xlu1 %v1298_v2 }
  0x7d   :  { %710 = vperm.xlu1 %1191, %v672_v9  }
  0x81   :  { %1192 = vset.pattern.permute.xlu1 %v1299_v59 }
  0xf6   :  { %v1105_v10 = vpop.f32.mrb[0].mxu0 }
  0xf7   :  { %v1145_v11 = vpop.f32.mrb[0].mxu1  ;;  %v1106_v12 = vpop.f32.mrb[1].mxu0 }
  0xf8   :  { %v1107_v13 = vadd.f32 %v1106_v12, %v1105_v10  ;;  %v1146_v14 = vpop.f32.mrb[1].mxu1  ;;  %v1108_v15 = vpop.f32.mrb[2].mxu0 }
  0xf9   :  { %v1147_v16 = vadd.f32 %v1146_v14, %v1145_v11  ;;  %v1148_v17 = vpop.f32.mrb[2].mxu1  ;;  %v1109_v18 = vpop.f32.mrb[3].mxu0 }
  0xfa   :  { %v1110_v19 = vadd.f32 %v1109_v18, %v1108_v15  ;;  %v1149_v20 = vpop.f32.mrb[3].mxu1  ;;  %v1610_v18 = vpop.permute.xlu1 %624 }
  0xfb   :  { %v1150_v21 = vadd.f32 %v1149_v20, %v1148_v17  ;;  %v1580_v22 = vadd.f32 %v1147_v16, %v1107_v13  ;;  %v1620_v20 = vld [vmem:[%s1879_s2 + $0x28] sm:$0xff] }
  0xfd   :  { %v505_v23 = vsel %vm504_vm0, %v1580_v22, 0.0  ;;  %v1584_v24 = vadd.f32 %v1150_v21, %v1110_v19 }
  0xfe   :  { %506 = vadd.xlane.f32.xlu0 %v505_v23  ;;  %v1111_v25 = vpop.f32.mrb[4].mxu0  ;;  %v1613_v19 = vpop.permute.xlu1 %629  ;;  %v1630_v23 = vld [vmem:[%s1879_s2 + $0x38] sm:$0xff] }
  0xff   :  { %v1151_v26 = vpop.f32.mrb[4].mxu1  ;;  %v1112_v27 = vpop.f32.mrb[5].mxu0  ;;  %v508_v34 = vsel %vm504_vm0, %v1584_v24, 0.0 }
 0x100   :  { %v1113_v28 = vadd.f32 %v1112_v27, %v1111_v25  ;;  %v1152_v29 = vpop.f32.mrb[5].mxu1  ;;  %v1114_v30 = vpop.f32.mrb[6].mxu0  ;;  %v1635_v25 = vld [vmem:[%s1879_s2 + $0x30] sm:$0xff]  ;;  %s1302_s2 = smov 124  }
 0x101   :  { %v1153_v31 = vadd.f32 %v1152_v29, %v1151_v26  ;;  %v1154_v32 = vpop.f32.mrb[6].mxu1  ;;  %v1115_v33 = vpop.f32.mrb[7].mxu0 }
 0x102   :  { %v1116_v35 = vadd.f32 %v1115_v33, %v1114_v30  ;;  %v1155_v36 = vpop.f32.mrb[7].mxu1  ;;  %509 = vadd.xlane.f32.xlu0 %v508_v34  ;;  %v1623_v21 = vpop.permute.xlu1 %634 }
 0x103   :  { %v1156_v37 = vadd.f32 %v1155_v36, %v1154_v32  ;;  %v1588_v38 = vadd.f32 %v1153_v31, %v1113_v28 }
 0x105   :  { %v511_v39 = vsel %vm504_vm0, %v1588_v38, 0.0  ;;  %v1592_v40 = vadd.f32 %v1156_v37, %v1116_v35  ;;  %v1666_v35 = vpop.permute.xlu0 %619 }
 0x106   :  { %512 = vadd.xlane.f32.xlu1 %v511_v39  ;;  %v1117_v41 = vpop.f32.mrb[8].mxu0  ;;  %v1640_v26 = vpop.permute.xlu1 %639 }
 0x107   :  { %v1157_v42 = vpop.f32.mrb[8].mxu1  ;;  %v1118_v43 = vpop.f32.mrb[9].mxu0  ;;  %v514_v50 = vsel %vm504_vm0, %v1592_v40, 0.0 }
 0x108   :  { %v1119_v44 = vadd.f32 %v1118_v43, %v1117_v41  ;;  %v1158_v45 = vpop.f32.mrb[9].mxu1  ;;  %v1120_v46 = vpop.f32.mrb[10].mxu0 }
 0x109   :  { %v1159_v47 = vadd.f32 %v1158_v45, %v1157_v42  ;;  %v1160_v48 = vpop.f32.mrb[10].mxu1  ;;  %v1121_v49 = vpop.f32.mrb[11].mxu0 }
 0x10a   :  { %v1122_v51 = vadd.f32 %v1121_v49, %v1120_v46  ;;  %v1161_v52 = vpop.f32.mrb[11].mxu1  ;;  %515 = vadd.xlane.f32.xlu1 %v514_v50  ;;  %v1645_v27 = vpop.permute.xlu1 %644 }
 0x10b   :  { %v1162_v53 = vadd.f32 %v1161_v52, %v1160_v48  ;;  %v1596_v54 = vadd.f32 %v1159_v47, %v1119_v44  ;;  %v1671_v37 = vpop.permute.xlu0 %680 }
 0x10d   :  { %v517_v55 = vsel %vm504_vm0, %v1596_v54, 0.0  ;;  %v1600_v56 = vadd.f32 %v1162_v53, %v1122_v51 }
 0x10e   :  { %518 = vadd.xlane.f32.xlu0 %v517_v55  ;;  %v1123_v57 = vpop.f32.mrb[12].mxu0  ;;  %v1648_v28 = vpop.permute.xlu1 %649 }
 0x10f   :  { %v1163_v61 = vpop.f32.mrb[12].mxu1  ;;  %v1124_v62 = vpop.f32.mrb[13].mxu0  ;;  %v520_v1 = vsel %vm504_vm0, %v1600_v56, 0.0 }
 0x110   :  { %v1125_v3 = vadd.f32 %v1124_v62, %v1123_v57  ;;  %v1164_v5 = vpop.f32.mrb[13].mxu1  ;;  %521 = vadd.xlane.f32.xlu1 %v520_v1  ;;  %v1126_v7 = vpop.f32.mrb[14].mxu0 }
 0x111   :  { %v1165_v9 = vadd.f32 %v1164_v5, %v1163_v61  ;;  %v1166_v10 = vpop.f32.mrb[14].mxu1  ;;  %v1127_v11 = vpop.f32.mrb[15].mxu0 }
 0x112   :  { %v1128_v12 = vadd.f32 %v1127_v11, %v1126_v7  ;;  %v1167_v13 = vpop.f32.mrb[15].mxu1  ;;  %v1650_v29 = vpop.permute.xlu1 %654 }
 0x113   :  { %v1604_v14 = vadd.f32 %v1165_v9, %v1125_v3  ;;  %v1168_v15 = vadd.f32 %v1167_v13, %v1166_v10  ;;  %v1675_v41 = vpop.permute.xlu0 %690 }
 0x115   :  { %v523_v16 = vsel %vm504_vm0, %v1604_v14, 0.0  ;;  %v1608_v17 = vadd.f32 %v1168_v15, %v1128_v12 }
 0x116   :  { %524 = vadd.xlane.f32.xlu0 %v523_v16 }
 0x117   :  { %v526_v32 = vsel %vm504_vm0, %v1608_v17, 0.0  ;;  %v1677_v42 = vpop.permute.xlu0 %892 }
 0x11b   :  { %v1681_v44 = vpop.permute.xlu0 %904 }
 0x11f   :  { %v1685_v46 = vpop.permute.xlu0 %829 }
 0x121   :  { %908 = vperm.xlu1 %1192, %v1569_v8  }
 0x123   :  { %v1689_v48 = vpop.permute.xlu0 %837 }
 0x125   :  { %1193 = vset.pattern.permute.xlu1 %v1301_v6 }
 0x126   :  { %971 = vperm.xlu1 %1193, %v1519_v60  }
 0x12a   :  { %1195 = vset.pattern.permute.xlu1 %v1299_v59 }
 0x12b   :  { %912 = vperm.xlu1 %1195, %v1620_v20  }
 0x12c   :  { %845 = vperm.xlu0 %1189, %v1620_v20  }
 0x12f   :  { %1196 = vset.pattern.permute.xlu1 %v1300_v0  ;;  %v1652_v0 = vpop.permute.xlu1 %675 }
 0x130   :  { %853 = vperm.xlu1 %1196, %v1630_v23   ;;  %849 = vperm.xlu0 %1189, %v1635_v25  }
 0x133   :  { %v1654_v30 = vpop.permute.xlu1 %685 }
 0x134   :  { %1194 = vset.pattern.permute.xlu0 %v1301_v6  ;;  %1197 = vset.pattern.permute.xlu1 %v1299_v59 }
 0x135   :  { %963 = vperm.xlu0 %1194, %v1531_v63  }
 0x137   :  { %v1656_v31 = vpop.permute.xlu1 %825 }
 0x139   :  { %975 = vperm.xlu0 %1194, %v1569_v8  }
 0x13b   :  { %v1660_v59 = vpop.permute.xlu1 %695 }
 0x13f   :  { %v1662_v33 = vpop.permute.xlu1 %833 }
 0x143   :  { %v1664_v34 = vpop.permute.xlu1 %896 }
 0x147   :  { %v1669_v36 = vpop.permute.xlu1 %700 }
 0x14b   :  { %v1673_v39 = vpop.permute.xlu1 %900 }
 0x14f   :  { %v1679_v43 = vpop.permute.xlu1 %959 }
 0x153   :  { %v1683_v45 = vpop.permute.xlu1 %705 }
 0x154   :  { %527 = vadd.xlane.f32.xlu1 %v526_v32 }
 0x157   :  { %v1687_v47 = vpop.permute.xlu1 %841 }
 0x15b   :  { %v1691_v49 = vpop.permute.xlu1 %967 }
 0x15f   :  { %v1696_v53 = vpop.permute.xlu1 %710 }
 0x165   :  { %916 = vperm.xlu1 %1197, %v1635_v25  }
 0x18b   :  { %v507_v50 = vpop.xlane.xlu0 %506 }
 0x18c   :  { %v529_v51 = vmul.f32 0.125, %v507_v50 }
 0x18e   :  { %v1694_v52 = vsub.f32 %v1580_v22, %v529_v51 }
 0x18f   :  { %v510_v55 = vpop.xlane.xlu0 %509 }
 0x190   :  { %v530_v57 = vmul.f32 0.125, %v510_v55  ;;  %v545_v61 = vmul.f32 %v1694_v52, %v1694_v52 }
 0x192   :  { %v1701_v62 = vsub.f32 %v1584_v24, %v530_v57  ;;  %v553_v1 = vsel %vm504_vm0, %v545_v61, 0.0 }
 0x193   :  { %v513_v3 = vpop.xlane.xlu1 %512  ;;  %554 = vadd.xlane.f32.xlu0 %v553_v1 }
 0x194   :  { %v531_v5 = vmul.f32 0.125, %v513_v3  ;;  %v546_v7 = vmul.f32 %v1701_v62, %v1701_v62 }
 0x196   :  { %v1707_v22 = vsub.f32 %v1588_v38, %v531_v5  ;;  %v556_v9 = vsel %vm504_vm0, %v546_v7, 0.0 }
 0x197   :  { %v516_v10 = vpop.xlane.xlu1 %515  ;;  %557 = vadd.xlane.f32.xlu1 %v556_v9 }
 0x198   :  { %v532_v11 = vmul.f32 0.125, %v516_v10  ;;  %v547_v24 = vmul.f32 %v1707_v22, %v1707_v22 }
 0x19a   :  { %v1713_v12 = vsub.f32 %v1592_v40, %v532_v11  ;;  %v559_v13 = vsel %vm504_vm0, %v547_v24, 0.0 }
 0x19b   :  { %560 = vadd.xlane.f32.xlu0 %v559_v13  ;;  %v519_v15 = vpop.xlane.xlu0 %518 }
 0x19c   :  { %v533_v16 = vmul.f32 0.125, %v519_v15  ;;  %v548_v38 = vmul.f32 %v1713_v12, %v1713_v12 }
 0x19d   :  { %v522_v32 = vpop.xlane.xlu1 %521 }
 0x19e   :  { %v1719_v50 = vsub.f32 %v1596_v54, %v533_v16  ;;  %v534_v51 = vmul.f32 0.125, %v522_v32  ;;  %v562_v55 = vsel %vm504_vm0, %v548_v38, 0.0 }
 0x19f   :  { %563 = vadd.xlane.f32.xlu1 %v562_v55 }
 0x1a0   :  { %v1723_v57 = vsub.f32 %v1600_v56, %v534_v51  ;;  %v549_v40 = vmul.f32 %v1719_v50, %v1719_v50 }
 0x1a2   :  { %v565_v61 = vsel %vm504_vm0, %v549_v40, 0.0  ;;  %v550_v1 = vmul.f32 %v1723_v57, %v1723_v57 }
 0x1a3   :  { %566 = vadd.xlane.f32.xlu0 %v565_v61  ;;  %v525_v3 = vpop.xlane.xlu0 %524 }
 0x1a4   :  { %v535_v5 = vmul.f32 0.125, %v525_v3  ;;  %v568_v54 = vsel %vm504_vm0, %v550_v1, 0.0 }
 0x1a5   :  { %569 = vadd.xlane.f32.xlu1 %v568_v54 }
 0x1a6   :  { %v1732_v7 = vsub.f32 %v1604_v14, %v535_v5  ;;  %v1743_v14 = vpop.permute.xlu1 %908 }
 0x1a8   :  { %v551_v56 = vmul.f32 %v1732_v7, %v1732_v7 }
 0x1aa   :  { %v571_v9 = vsel %vm504_vm0, %v551_v56, 0.0  ;;  %v1746_v10 = vpop.permute.xlu1 %971 }
 0x1ab   :  { %572 = vadd.xlane.f32.xlu0 %v571_v9 }
 0x1ae   :  { %v1750_v11 = vpop.permute.xlu1 %912 }
 0x1b2   :  { %v1753_v24 = vpop.permute.xlu1 %853 }
 0x1b6   :  { %920 = vperm.xlu1 %1197, %v1630_v23  }
 0x1ba   :  { %1198 = vset.pattern.permute.xlu1 %v1301_v6 }
 0x1c1   :  { %979 = vperm.xlu0 %1194, %v1620_v20  }
 0x1c5   :  { %983 = vperm.xlu0 %1194, %v1635_v25  }
 0x1c9   :  { %1199 = vset.pattern.permute.xlu0 %v1298_v2 }
 0x1ca   :  { %755 = vperm.xlu0 %1199, %v1512_v58  }
 0x1ce   :  { %770 = vperm.xlu0 %1199, %v1519_v60  }
 0x1d2   :  { %780 = vperm.xlu0 %1199, %v1620_v20  }
 0x1d6   :  { %790 = vperm.xlu0 %1199, %v1630_v23  }
 0x1da   :  { %1201 = vset.pattern.permute.xlu0 %v1301_v6  ;;  %v1767_v6 = vpop.permute.xlu0 %845 }
 0x1e1   :  { %v528_v13 = vpop.xlane.xlu1 %527 }
 0x1e2   :  { %v536_v15 = vmul.f32 0.125, %v528_v13 }
 0x1e4   :  { %v1756_v58 = vsub.f32 %v1608_v17, %v536_v15  ;;  %v1769_v17 = vpop.permute.xlu0 %849 }
 0x1e5   :  { %v1775_v32 = vpop.permute.xlu1 %916 }
 0x1e6   :  { %v552_v60 = vmul.f32 %v1756_v58, %v1756_v58 }
 0x1e8   :  { %v574_v16 = vsel %vm504_vm0, %v552_v60, 0.0  ;;  %v1771_v20 = vpop.permute.xlu0 %963 }
 0x1e9   :  { %575 = vadd.xlane.f32.xlu1 %v574_v16 }
 0x1ec   :  { %v1773_v38 = vpop.permute.xlu0 %975 }
 0x1fa   :  { %987 = vperm.xlu1 %1198, %v1630_v23  }
 0x1fe   :  { %1200 = vset.pattern.permute.xlu1 %v1298_v2 }
 0x1ff   :  { %760 = vperm.xlu1 %1200, %v1531_v63  }
 0x203   :  { %765 = vperm.xlu1 %1200, %v1548_v4  }
 0x207   :  { %775 = vperm.xlu1 %1200, %v1569_v8  }
 0x20b   :  { %785 = vperm.xlu1 %1200, %v1635_v25  }
 0x220   :  { %v555_v23 = vpop.xlane.xlu0 %554 }
 0x221   :  { %v577_v51 = vmul.f32 0.125, %v555_v23 }
 0x223   :  { %v585_v4 = vadd.f32 1e-05, %v577_v51 }
 0x224   :  { %v558_v2 = vpop.xlane.xlu1 %557 }
 0x225   :  { %v578_v63 = vmul.f32 0.125, %v558_v2  ;;  %1258 = vrsqrt.f32 %v585_v4 }
 0x227   :  { %v586_v40 = vadd.f32 1e-05, %v578_v63 }
 0x228   :  { %v561_v55 = vpop.xlane.xlu0 %560 }
 0x229   :  { %v579_v61 = vmul.f32 0.125, %v561_v55  ;;  %1260 = vrsqrt.f32 %v586_v40 }
 0x22b   :  { %v587_v1 = vadd.f32 1e-05, %v579_v61 }
 0x22c   :  { %v564_v8 = vpop.xlane.xlu1 %563 }
 0x22d   :  { %v580_v25 = vmul.f32 0.125, %v564_v8  ;;  %1262 = vrsqrt.f32 %v587_v1 }
 0x22f   :  { %v588_v5 = vadd.f32 1e-05, %v580_v25  ;;  %v1259_v13 = vpop.eup %1258 }
 0x230   :  { %v567_v3 = vpop.xlane.xlu0 %566  ;;  %v601_v2 = vmul.f32 %v1259_v13, %v1694_v52 }
 0x231   :  { %v581_v54 = vmul.f32 0.125, %v567_v3  ;;  %1264 = vrsqrt.f32 %v588_v5 }
 0x232   :  { %v570_v56 = vpop.xlane.xlu1 %569  ;;  %v657_v40 = vmul.f32 %v1666_v35, %v601_v2 }
 0x233   :  { %v582_v9 = vmul.f32 0.125, %v570_v56  ;;  %v589_v15 = vadd.f32 1e-05, %v581_v54  ;;  %v1261_v60 = vpop.eup %1260 }
 0x234   :  { %v602_v51 = vmul.f32 %v1261_v60, %v1701_v62  ;;  %v713_v3 = vadd.f32 %v1652_v0, %v657_v40 }
 0x235   :  { %v590_v23 = vadd.f32 1e-05, %v582_v9  ;;  %1266 = vrsqrt.f32 %v589_v15 }
 0x236   :  { %v658_v8 = vmul.f32 %v1610_v18, %v602_v51  ;;  %v729_v35 = vmul.f32 0.2, %v713_v3  ;;  %vm721_vm1 = vcmp.ge.f32.partialorder %v713_v3, 0.0 }
 0x237   :  { %v1263_v55 = vpop.eup %1262  ;;  %1268 = vrsqrt.f32 %v590_v23 }
 0x238   :  { %v573_v16 = vpop.xlane.xlu0 %572  ;;  %v603_v25 = vmul.f32 %v1263_v55, %v1707_v22  ;;  %v714_v52 = vadd.f32 %v1671_v37, %v658_v8 }
 0x239   :  { %v583_v63 = vmul.f32 0.125, %v573_v16 }
 0x23a   :  { %v659_v62 = vmul.f32 %v1613_v19, %v603_v25  ;;  %v730_v9 = vmul.f32 0.2, %v714_v52  ;;  %vm722_vm2 = vcmp.ge.f32.partialorder %v714_v52, 0.0 }
 0x23b   :  { %v1265_v4 = vpop.eup %1264  ;;  %v591_v61 = vadd.f32 1e-05, %v583_v63 }
 0x23c   :  { %v604_v1 = vmul.f32 %v1265_v4, %v1713_v12  ;;  %v715_v13 = vadd.f32 %v1654_v30, %v659_v62  ;;  %v737_v12 = vsel %vm721_vm1, %v713_v3, %v729_v35  ;;  %v738_v19 = vsel %vm722_vm2, %v714_v52, %v730_v9 }
 0x23d   :  { %1270 = vrsqrt.f32 %v591_v61  ;;  %v857_v2 = vmul.f32 %v1685_v46, %v738_v19  ;;  %v991_v4 = vmul.f32 %v1771_v20, %v738_v19 }
 0x23e   :  { %v660_v54 = vmul.f32 %v1623_v21, %v604_v1  ;;  %v1794_v21 = vpop.permute.xlu1 %920  ;;  %v731_v60 = vmul.f32 0.2, %v715_v13  ;;  %vm723_vm3 = vcmp.ge.f32.partialorder %v715_v13, 0.0 }
 0x23f   :  { %v1267_v5 = vpop.eup %1266  ;;  %v1000_v3 = vsel %vm998_vm7, %v991_v4, 0.0 }
 0x240   :  { %v1787_v56 = vpop.permute.xlu0 %979  ;;  %v605_v22 = vmul.f32 %v1267_v5, %v1719_v50  ;;  %v716_v0 = vadd.f32 %v1675_v41, %v660_v54  ;;  %v856_v50 = vmul.f32 %v1656_v31, %v737_v12  ;;  %v923_v41 = vmul.f32 %v1677_v42, %v737_v12 }
 0x241   :  { %v1269_v18 = vpop.eup %1268  ;;  %v739_v55 = vsel %vm723_vm3, %v715_v13, %v731_v60  ;;  %v990_v31 = vmul.f32 %v1679_v43, %v737_v12 }
 0x242   :  { %v606_v37 = vmul.f32 %v1269_v18, %v1723_v57  ;;  %v661_v15 = vmul.f32 %v1640_v26, %v605_v22  ;;  %v732_v30 = vmul.f32 0.2, %v716_v0  ;;  %vm724_vm5 = vcmp.ge.f32.partialorder %v716_v0, 0.0 }
 0x243   :  { %v924_v26 = vmul.f32 %v1664_v34, %v738_v19  ;;  %v865_v42 = vsel %vm864_vm4, %v856_v50, 0.0  ;;  %v932_v34 = vsel %vm931_vm6, %v923_v41, 0.0  ;;  %v925_v20 = vmul.f32 %v1673_v39, %v739_v55 }
 0x244   :  { %v1796_v16 = vpop.permute.xlu0 %983  ;;  %v662_v57 = vmul.f32 %v1645_v27, %v606_v37  ;;  %v717_v51 = vadd.f32 %v1660_v59, %v661_v15  ;;  %v740_v8 = vsel %vm724_vm5, %v716_v0, %v732_v30  ;;  %v866_v27 = vsel %vm864_vm4, %v857_v2, 0.0 }
 0x245   :  { %v933_v43 = vsel %vm931_vm6, %v924_v26, 0.0  ;;  %v859_v5 = vmul.f32 %v1689_v48, %v740_v8  ;;  %v992_v54 = vmul.f32 %v1691_v49, %v739_v55  ;;  %v993_v39 = vmul.f32 %v1746_v10, %v740_v8 }
 0x246   :  { %v718_v59 = vadd.f32 %v1669_v36, %v662_v57  ;;  %v733_v1 = vmul.f32 0.2, %v717_v51  ;;  %vm725_vm9 = vcmp.ge.f32.partialorder %v717_v51, 0.0  ;;  %v867_v36 = vadd.f32 %v866_v27, %v865_v42 }
 0x247   :  { %v1271_v23 = vpop.eup %1270  ;;  %v999_v35 = vsel %vm998_vm7, %v990_v31, 0.0  ;;  %v934_v13 = vadd.f32 %v933_v43, %v932_v34  ;;  %v870_v15 = vsel %vm864_vm4, %v859_v5, 0.0  ;;  %v1004_v2 = vsel %vm998_vm7, %v993_v39, 0.0 }
 0x248   :  { %v607_v63 = vmul.f32 %v1271_v23, %v1732_v7  ;;  %v858_v7 = vmul.f32 %v1662_v33, %v739_v55  ;;  %v926_v33 = vmul.f32 %v1681_v44, %v740_v8  ;;  %v734_v9 = vmul.f32 0.2, %v718_v59 }
 0x249   :  { %v756_v61 = vpop.permute.xlu0 %755  ;;  %vm726_vm10 = vcmp.ge.f32.partialorder %v718_v59, 0.0  ;;  %v741_v22 = vsel %vm725_vm9, %v717_v51, %v733_v1  ;;  %v1001_v0 = vadd.f32 %v1000_v3, %v999_v35  ;;  %v1002_v44 = vsel %vm998_vm7, %v992_v54, 0.0 }
 0x24a   :  { %v663_v52 = vmul.f32 %v1648_v28, %v607_v63  ;;  %v868_v18 = vsel %vm864_vm4, %v858_v7, 0.0  ;;  %v935_v28 = vsel %vm931_vm6, %v925_v20, 0.0  ;;  %v793_v10 = vmul.f32 %v756_v61, %v737_v12 }
 0x24b   :  { %v869_v23 = vadd.f32 %v868_v18, %v867_v36  ;;  %v936_v30 = vadd.f32 %v935_v28, %v934_v13  ;;  %v937_v50 = vsel %vm931_vm6, %v926_v33, 0.0  ;;  %v742_v41 = vsel %vm726_vm10, %v718_v59, %v734_v9 }
 0x24c   :  { %v719_v48 = vadd.f32 %v1683_v45, %v663_v52  ;;  %v860_v57 = vmul.f32 %v1687_v47, %v741_v22  ;;  %v927_v26 = vmul.f32 %v1743_v14, %v741_v22  ;;  %v994_v63 = vmul.f32 %v1773_v38, %v741_v22 }
 0x24d   :  { %v771_v49 = vpop.permute.xlu0 %770  ;;  %v871_v51 = vadd.f32 %v870_v15, %v869_v23  ;;  %v1003_v4 = vadd.f32 %v1002_v44, %v1001_v0  ;;  %v861_v42 = vmul.f32 %v1767_v6, %v742_v41  ;;  %v938_v27 = vadd.f32 %v937_v50, %v936_v30 }
 0x24e   :  { %vm727_vm11 = vcmp.ge.f32.partialorder %v719_v48, 0.0  ;;  %v796_v31 = vmul.f32 %v771_v49, %v740_v8  ;;  %v872_v59 = vsel %vm864_vm4, %v860_v57, 0.0  ;;  %v928_v7 = vmul.f32 %v1750_v11, %v742_v41 }
 0x24f   :  { %v1005_v34 = vadd.f32 %v1004_v2, %v1003_v4  ;;  %v939_v38 = vsel %vm931_vm6, %v927_v26, 0.0  ;;  %v995_v43 = vmul.f32 %v1787_v56, %v742_v41  ;;  %v873_v54 = vadd.f32 %v872_v59, %v871_v51 }
 0x250   :  { %v807_v3 = vsel %vm801_vm8, %v796_v31, 0.0  ;;  %v874_v11 = vsel %vm864_vm4, %v861_v42, 0.0  ;;  %v940_v18 = vadd.f32 %v939_v38, %v938_v27  ;;  %v941_v0 = vsel %vm931_vm6, %v928_v7, 0.0 }
 0x251   :  { %v781_v47 = vpop.permute.xlu0 %780 }
 0x252   :  { %v798_v52 = vmul.f32 %v781_v47, %v742_v41 }
 0x276   :  { %v576_v40 = vpop.xlane.xlu1 %575 }
 0x277   :  { %v584_v46 = vmul.f32 0.125, %v576_v40  ;;  %v735_v40 = vmul.f32 0.2, %v719_v48 }
 0x279   :  { %v592_v25 = vadd.f32 1e-05, %v584_v46  ;;  %v743_v1 = vsel %vm727_vm11, %v719_v48, %v735_v40  ;;  %v1008_v48 = vsel %vm998_vm7, %v995_v43, 0.0 }
 0x27a   :  { %v1816_v62 = vpop.permute.xlu1 %987  ;;  %v862_v39 = vmul.f32 %v1769_v17, %v743_v1  ;;  %v929_v35 = vmul.f32 %v1775_v32, %v743_v1  ;;  %v875_v17 = vadd.f32 %v874_v11, %v873_v54 }
 0x27b   :  { %1272 = vrsqrt.f32 %v592_v25  ;;  %v1006_v25 = vsel %vm998_vm7, %v994_v63, 0.0 }
 0x27c   :  { %v1007_v56 = vadd.f32 %v1006_v25, %v1005_v34  ;;  %v876_v15 = vsel %vm864_vm4, %v862_v39, 0.0  ;;  %v943_v44 = vsel %vm931_vm6, %v929_v35, 0.0 }
 0x27e   :  { %v761_v37 = vpop.permute.xlu1 %760  ;;  %v1009_v23 = vadd.f32 %v1008_v48, %v1007_v56 }
 0x27f   :  { %v794_v60 = vmul.f32 %v761_v37, %v738_v19  ;;  %v802_v19 = vsel %vm801_vm8, %v793_v10, 0.0 }
 0x281   :  { %v803_v45 = vsel %vm801_vm8, %v794_v60, 0.0  ;;  %v942_v60 = vadd.f32 %v941_v0, %v940_v18 }
 0x282   :  { %v766_v12 = vpop.permute.xlu1 %765  ;;  %v804_v61 = vadd.f32 %v803_v45, %v802_v19  ;;  %v877_v45 = vadd.f32 %v876_v15, %v875_v17 }
 0x283   :  { %v795_v46 = vmul.f32 %v766_v12, %v739_v55  ;;  %v944_v51 = vadd.f32 %v943_v44, %v942_v60 }
 0x285   :  { %v1273_v14 = vpop.eup %1272  ;;  %v805_v20 = vsel %vm801_vm8, %v795_v46, 0.0 }
 0x286   :  { %v608_v55 = vmul.f32 %v1273_v14, %v1756_v58  ;;  %v806_v8 = vadd.f32 %v805_v20, %v804_v61  ;;  %v776_v6 = vpop.permute.xlu1 %775  ;;  %v996_v58 = vmul.f32 %v1796_v16, %v743_v1  ;;  %v791_v16 = vpop.permute.xlu0 %790 }
 0x287   :  { %v797_v5 = vmul.f32 %v776_v6, %v741_v22 }
 0x288   :  { %v664_v36 = vmul.f32 %v1650_v29, %v608_v55  ;;  %v808_v33 = vadd.f32 %v807_v3, %v806_v8  ;;  %v811_v29 = vsel %vm801_vm8, %v798_v52, 0.0 }
 0x289   :  { %v809_v9 = vsel %vm801_vm8, %v797_v5, 0.0 }
 0x28a   :  { %v720_v13 = vadd.f32 %v1696_v53, %v664_v36  ;;  %v810_v28 = vadd.f32 %v809_v9, %v808_v33  ;;  %v786_v22 = vpop.permute.xlu1 %785  ;;  %v1010_v53 = vsel %vm998_vm7, %v996_v58, 0.0 }
 0x28b   :  { %v799_v49 = vmul.f32 %v786_v22, %v743_v1  ;;  %v1011_v63 = vadd.f32 %v1010_v53, %v1009_v23 }
 0x28c   :  { %vm728_vm12 = vcmp.ge.f32.partialorder %v720_v13, 0.0  ;;  %v736_v32 = vmul.f32 0.2, %v720_v13  ;;  %v812_v37 = vadd.f32 %v811_v29, %v810_v28 }
 0x28d   :  { %v813_v10 = vsel %vm801_vm8, %v799_v49, 0.0 }
 0x28e   :  { %v744_v30 = vsel %vm728_vm12, %v720_v13, %v736_v32  ;;  %v814_v50 = vadd.f32 %v813_v10, %v812_v37 }
 0x28f   :  { %v863_v2 = vmul.f32 %v1753_v24, %v744_v30  ;;  %v930_v41 = vmul.f32 %v1794_v21, %v744_v30  ;;  %v997_v57 = vmul.f32 %v1816_v62, %v744_v30  ;;  %v800_v26 = vmul.f32 %v791_v16, %v744_v30 }
 0x291   :  { %v878_v4 = vsel %vm864_vm4, %v863_v2, 0.0  ;;  %v945_v40 = vsel %vm931_vm6, %v930_v41, 0.0  ;;  %v1012_v12 = vsel %vm998_vm7, %v997_v57, 0.0  ;;  %v815_v19 = vsel %vm801_vm8, %v800_v26, 0.0 }
 0x292   :  { %v1013_v31 = vadd.f32 %v1012_v12, %v1011_v63  ;;  %v816_v46 = vadd.f32 %v815_v19, %v814_v50  ;;  %v946_v42 = vadd.f32 %v945_v40, %v944_v51  ;;  %v879_v24 = vadd.f32 %v878_v4, %v877_v45 }
 0x294   :  { %v1014_v27 = vrot.slane %v1013_v31, 4  ;;  %v947_v21 = vrot.slane %v946_v42, 4  ;;  %v880_v34 = vrot.slane %v879_v24, 4  ;;  %v817_v52 = vrot.slane %v816_v46, 4 }
 0x296   :  { %v1015_v62 = vadd.f32 %v1014_v27, %v1013_v31  ;;  %v948_v47 = vadd.f32 %v947_v21, %v946_v42  ;;  %v881_v61 = vadd.f32 %v880_v34, %v879_v24  ;;  %v818_v5 = vadd.f32 %v817_v52, %v816_v46 }
 0x298   :  { %v1016_v14 = vrot.slane %v1015_v62, 2  ;;  %v949_v59 = vrot.slane %v948_v47, 2  ;;  %v882_v7 = vrot.slane %v881_v61, 2  ;;  %v819_v54 = vrot.slane %v818_v5, 2 }
 0x29a   :  { %v950_v38 = vadd.f32 %v949_v59, %v948_v47  ;;  %v883_v20 = vadd.f32 %v882_v7, %v881_v61  ;;  %v1017_v25 = vadd.f32 %v1016_v14, %v1015_v62  ;;  %v820_v11 = vadd.f32 %v819_v54, %v818_v5 }
 0x29c   :  { %v951_v1 = vrot.slane %v950_v38, 1  ;;  %v884_v55 = vrot.slane %v883_v20, 1  ;;  %v1018_v43 = vrot.slane %v1017_v25, 1  ;;  %v821_v36 = vrot.slane %v820_v11, 1 }
 0x29e   :  { %v952_v8 = vadd.f32 %v951_v1, %v950_v38  ;;  %v885_v6 = vadd.f32 %v884_v55, %v883_v20  ;;  %v1019_v3 = vadd.f32 %v1018_v43, %v1017_v25  ;;  %v822_v33 = vadd.f32 %v821_v36, %v820_v11 }
 0x2a0   :  { %954 = vrot.lane.b32.xlu0 %v952_v8, %s1302_s2  ;;  %887 = vrot.lane.b32.xlu1 %v885_v6, %s1303_s6 }
 0x2a4   :  { %1021 = vrot.lane.b32.xlu1 %v1019_v3, %s1304_s7 }
 0x312   :  { %v888_v39 = vpop.permute.xlu1 %887  ;;  %v955_v58 = vpop.permute.xlu0 %954 }
 0x313   :  { %v890_v35 = vadd.f32 %v888_v39, %v822_v33 }
 0x315   :  { %v957_v9 = vadd.f32 %v955_v58, %v890_v35 }
 0x316   :  { %v1022_v18 = vpop.permute.xlu1 %1021 }
 0x317   :  { %v1024_v56 = vadd.f32 %v1022_v18, %v957_v9 }
 0x319   :  { %1026 = vst.msk [vmem:[#allocation2] sm:$0x1] %vm1025_vm13, %v1024_v56 }
 0x31a   :  { %1285 = shalt.err (!%p1282_p4)
}
 0x31b   :  { %s1286_s13 = scalar_lea.hbm %s1882_s5, 16 }
 0x31c   :  { %p1287_p5 = scmp.ne.s32.totalorder %s1882_s5, %s1286_s13  ;;  %p1290_p6 = scmp.lt.u32.totalorder %s1286_s13, %s1882_s5 }
 0x31e   :  { %p1292_p7 = pnand %p1290_p6, %p1287_p5 }
 0x320   :  { %1295 = shalt.err (!%p1292_p7)
}
 0x321   :  { %1036 = dma.vmem_to_hbm [thread:$0]  %s1034_s0, 16, %s1882_s5, [#allocation3]  }
 0x322   :  { %1296 = dma.done.wait [#allocation3], 16  }
 0x323   :  { %1297 = vsyncadd [#allocation3], 4294967280 }
 0x324   :  { %1040 = vsyncpa [#allocation3], 1 }

</bundles_post_ra>
